<compile_context>
chip_gen: v7x
topology: tpu7x:2x2x1
jax: 0.10.0
libtpu: 0.0.40
codegen_flags: <defaults>
</compile_context>

<pallas_src>
import functools

import jax
import jax.numpy as jnp
from jax.experimental import pallas as pl
from jax.experimental.pallas import tpu as pltpu


def _attention_kernel(x_ref, wqkv_ref, wproj_ref, bproj_ref, o_ref,
                      *, num_heads: int, head_dim: int):
    """One grid step: a (b_blk, N, C) slab of the batch.

    x / W_qkv / W_proj are bf16 (MXU-native); all matmuls accumulate in f32
    via preferred_element_type. Bias and softmax math stay f32.
    """
    b_blk, n, c = x_ref.shape
    hd = head_dim
    rows = b_blk * n

    # ---- fused QKV projection (one lane-dense MXU call), downcast to bf16
    #      right away so the (rows, 3C) intermediate is half-size for the rest
    #      of the kernel. Softmax scale is pre-folded into the q-columns of
    #      W_qkv in the wrapper.
    x2 = x_ref[...].reshape(rows, c)                                 # bf16 (rows, C)
    qkv = jnp.dot(x2, wqkv_ref[...],
                  preferred_element_type=jnp.float32)                # f32 (rows, 3C)
    qkv = qkv.astype(jnp.bfloat16).reshape(b_blk, n, 3 * c)          # bf16, leading reshape

    # ---- gather heads onto a new leading axis so attention runs as ONE pair
    #      of batched einsums over (H * b_blk) instead of H per-head einsums.
    def head_slice(base, h):
        lo = base + h * hd
        return qkv[:, :, lo:lo + hd]                                 # (b_blk, N, hd)

    q = jnp.stack([head_slice(0, h) for h in range(num_heads)], axis=0)
    k = jnp.stack([head_slice(c, h) for h in range(num_heads)], axis=0)
    v = jnp.stack([head_slice(2 * c, h) for h in range(num_heads)], axis=0)
    q = q.reshape(num_heads * b_blk, n, hd)                          # (H*Bb, N, hd) bf16
    k = k.reshape(num_heads * b_blk, n, hd)
    v = v.reshape(num_heads * b_blk, n, hd)

    # ---- scores + softmax (f32 elementwise; scale already folded into q)
    s = jnp.einsum('bqd,bkd->bqk', q, k,
                   preferred_element_type=jnp.float32)               # (H*Bb, N, N) f32
    s = s - jnp.max(s, axis=-1, keepdims=True)
    p = jnp.exp(s)
    p = p * pl.reciprocal(jnp.sum(p, axis=-1, keepdims=True), approx=True)
    # attn_drop is identity (p = 0.0 / eval mode)

    ctx = jnp.einsum('bqk,bkd->bqd', p.astype(jnp.bfloat16), v,
                     preferred_element_type=jnp.float32)             # (H*Bb, N, hd) f32
    ctx = ctx.astype(jnp.bfloat16).reshape(num_heads, b_blk, n, hd)

    # ---- reassemble the head-concatenated context once (single lane concat),
    #      then ONE projection matmul with K=C (accumulation in the MXU f32
    #      accumulator — no per-head VALU add chain).
    ctx_all = jnp.concatenate([ctx[h] for h in range(num_heads)], axis=-1)   # (Bb, N, C)
    ctx_all = ctx_all.reshape(rows, c)
    out = jnp.dot(ctx_all, wproj_ref[...],
                  preferred_element_type=jnp.float32)                # f32 (rows, C)
    out = out + bproj_ref[...]                                       # + (1, C) bias
    # proj_drop is identity
    o_ref[...] = out.reshape(b_blk, n, c).astype(o_ref.dtype)


def _block_vmem_bytes(b_blk, seq, chans, heads, out_itemsize):
    """Rough per-grid-step VMEM footprint (double-buffered I/O + live temps)."""
    rows = b_blk * seq
    hb = heads * b_blk
    return int(
        2 * rows * chans * 2                      # x block, bf16, double-buffered
        + 2 * rows * chans * out_itemsize         # out block, double-buffered
        + 2 * (chans * 3 * chans + chans * chans) * 2 + 2 * chans * 4  # weights + bias
        + rows * 3 * chans * 4                    # f32 QKV before downcast
        + 2 * rows * 3 * chans * 2                # bf16 QKV + stacked q/k/v copies
        + 2 * hb * seq * seq * 4                  # scores + probs (f32)
        + 2 * rows * chans * 2                    # bf16 ctx + lane-concat copy
        + rows * chans * 4                        # f32 projection result
    )


def _tpu_memory_profile():
    """(vmem_capacity_bytes, assumed tensorcores per chip).

    Falls back to the most conservative generation (v7x: 64 MiB / 2 TCs)
    if the hardware query is unavailable.
    """
    try:
        cap = int(pltpu.get_tpu_info().vmem_capacity_bytes)
    except Exception:
        cap = 64 * 1024 * 1024
    cores = 2 if cap <= 64 * 1024 * 1024 else 1   # v7x: 64 MiB/TC, 2 TCs/chip
    return cap, cores


def _pick_batch_block(batch, seq, chans, heads, out_itemsize,
                      vmem_budget, min_steps):
    """Largest divisor of `batch` whose per-step footprint fits the VMEM budget
    while keeping at least `min_steps` grid steps (>=2 per TensorCore)."""
    min_steps = max(1, min(min_steps, batch))
    best = 1
    for cand in range(1, batch + 1):
        if batch % cand:
            continue
        if batch // cand < min_steps:
            continue
        if _block_vmem_bytes(cand, seq, chans, heads, out_itemsize) > vmem_budget:
            continue
        best = cand
    return best


def attention_forward(x, w_qkv, w_proj, b_proj, *, num_heads: int, out_dtype=None):
    B, N, C = x.shape
    assert C % num_heads == 0
    head_dim = C // num_heads
    scale = head_dim ** (-0.5)
    out_dtype = x.dtype if out_dtype is None else out_dtype
    out_itemsize = jnp.dtype(out_dtype).itemsize

    vmem_cap, n_cores = _tpu_memory_profile()
    vmem_budget = int(0.70 * vmem_cap)            # headroom for Mosaic internals
    b_blk = _pick_batch_block(B, N, C, num_heads, out_itemsize,
                              vmem_budget, min_steps=2 * n_cores)
    grid = (B // b_blk,)

    # bf16 MXU operands; softmax scale folded into the q-columns of W_qkv
    # (one-time weight transform fused into the cast that already runs here).
    col_scale = jnp.concatenate([jnp.full((C,), scale, dtype=w_qkv.dtype),
                                 jnp.ones((2 * C,), dtype=w_qkv.dtype)])
    x_bf = x.astype(jnp.bfloat16)
    wqkv_bf = (w_qkv * col_scale[None, :]).astype(jnp.bfloat16)
    wproj_bf = w_proj.astype(jnp.bfloat16)
    bproj_2d = b_proj.reshape(1, C).astype(jnp.float32)

    kernel = functools.partial(_attention_kernel, num_heads=num_heads,
                               head_dim=head_dim)

    # Advisory cost estimate for XLA scheduling around the custom call.
    flops = (2 * B * N * C * (3 * C)
             + 4 * B * num_heads * N * N * head_dim
             + 2 * B * N * C * C)
    cost = pl.CostEstimate(
        flops=int(flops),
        transcendentals=int(B * num_heads * N * N),
        bytes_accessed=int(x_bf.size * 2 + wqkv_bf.size * 2 + wproj_bf.size * 2
                           + bproj_2d.size * 4 + B * N * C * out_itemsize),
    )

    vmem_est = _block_vmem_bytes(b_blk, N, C, num_heads, out_itemsize)
    vmem_limit = int(min(max(32 * 1024 * 1024, 2 * vmem_est),
                         int(0.9 * vmem_cap)))

    def run(single_buffer_weights):
        # Weights / bias never change across grid steps: single-buffer them to
        # reclaim VMEM (most valuable on v7x's 64 MiB).
        wkw = dict(pipeline_mode=pl.Buffered(1)) if single_buffer_weights else {}
        return pl.pallas_call(
            kernel,
            out_shape=jax.ShapeDtypeStruct((B, N, C), out_dtype),
            grid_spec=pltpu.PrefetchScalarGridSpec(
                num_scalar_prefetch=0,
                grid=grid,
                in_specs=[
                    pl.BlockSpec((b_blk, N, C), lambda b: (b, 0, 0)),
                    pl.BlockSpec((C, 3 * C), lambda b: (0, 0), **wkw),
                    pl.BlockSpec((C, C), lambda b: (0, 0), **wkw),
                    pl.BlockSpec((1, C), lambda b: (0, 0), **wkw),
                ],
                out_specs=pl.BlockSpec((b_blk, N, C), lambda b: (b, 0, 0)),
            ),
            compiler_params=pltpu.CompilerParams(
                dimension_semantics=("parallel",),
                vmem_limit_bytes=vmem_limit,
            ),
            cost_estimate=cost,
        )(x_bf, wqkv_bf, wproj_bf, bproj_2d)

    try:
        return run(single_buffer_weights=True)
    except Exception:
        # Fallback if pl.Buffered(1) on pallas_call BlockSpecs is unsupported
        # in this jax version: default double-buffering (correctness identical).
        return run(single_buffer_weights=False)


def _reference(x, w_qkv, w_proj, b_proj, *, num_heads: int):
    # Pure-JAX f32 reference mirroring the PyTorch forward.
    B, N, C = x.shape
    hd = C // num_heads
    scale = hd ** (-0.5)
    qkv = (x @ w_qkv).reshape(B, N, 3, num_heads, hd).transpose(2, 0, 3, 1, 4)
    q, k, v = qkv[0], qkv[1], qkv[2]                  # (B, H, N, hd)
    attn = (q @ jnp.swapaxes(k, -2, -1)) * scale
    attn = jax.nn.softmax(attn, axis=-1)
    out = (attn @ v).transpose(0, 2, 1, 3).reshape(B, N, C)
    return out @ w_proj + b_proj


if __name__ == "__main__":
    # Small shapes consistent with the module: B=2, N=8, dim=32, heads=8.
    B, N, C = 2, 8, 32
    num_heads = 8

    key = jax.random.PRNGKey(0)
    kx, kqkv, kproj, kbias = jax.random.split(key, 4)

    x = jax.random.normal(kx, (B, N, C), dtype=jnp.float32)

    # Deterministic "linear layer" params (PyTorch-like uniform init bound).
    bound = 1.0 / (C ** 0.5)
    w_qkv = jax.random.uniform(kqkv, (C, 3 * C), jnp.float32, -bound, bound)
    w_proj = jax.random.uniform(kproj, (C, C), jnp.float32, -bound, bound)
    b_proj = jax.random.uniform(kbias, (C,), jnp.float32, -bound, bound)

    out = attention_forward(x, w_qkv, w_proj, b_proj, num_heads=num_heads)
    out = jax.block_until_ready(out)

    ref = _reference(x, w_qkv, w_proj, b_proj, num_heads=num_heads)
    assert out.shape == (B, N, C)
    # bf16 MXU operands + approx reciprocal -> looser agreement vs f32 reference.
    max_diff = float(jnp.max(jnp.abs(out - ref)))
    assert jnp.allclose(out, ref, atol=3e-2, rtol=3e-2), (
        f"mismatch vs reference: max abs diff = {max_diff}")

    # TODO(synk): ABFT checksum path (enable_abft / verify_attn_integrity) is
    # host-side bookkeeping on saved attention weights, not part of the forward
    # hot path; omitted from the kernel.
    print("KERNEL_OK")
</pallas_src>

<mosaic_0001>
module attributes {stable_mosaic.version = 11 : i64} {
  func.func @_attention_kernel(%arg0: i32, %arg1: memref<1x8x32xbf16, #tpu.memory_space<vmem>>, %arg2: memref<32x96xbf16, #tpu.memory_space<vmem>>, %arg3: memref<32x32xbf16, #tpu.memory_space<vmem>>, %arg4: memref<1x32xf32, #tpu.memory_space<vmem>>, %arg5: memref<1x8x32xf32, #tpu.memory_space<vmem>>) attributes {dimension_semantics = [#tpu.dimension_semantics<parallel>], iteration_bounds = array<i64: 2>, scalar_prefetch = 0 : i64, scratch_operands = 0 : i64, tpu.core_type = #tpu.core_type<tc>, window_params = [{transform_indices = @transform_0, window_bounds = array<i64: 1, 8, 32>}, {pipeline_mode = #tpu.pipeline_mode<synchronous>, transform_indices = @transform_1, window_bounds = array<i64: 32, 96>}, {pipeline_mode = #tpu.pipeline_mode<synchronous>, transform_indices = @transform_2, window_bounds = array<i64: 32, 32>}, {pipeline_mode = #tpu.pipeline_mode<synchronous>, transform_indices = @transform_3, window_bounds = array<i64: 1, 32>}, {transform_indices = @transform_4, window_bounds = array<i64: 1, 8, 32>}]} {
    %c0 = arith.constant 0 : index
    %c0_0 = arith.constant 0 : index
    %c0_1 = arith.constant 0 : index
    %0 = vector.load %arg1[%c0, %c0_0, %c0_1] : memref<1x8x32xbf16, #tpu.memory_space<vmem>>, vector<1x8x32xbf16>
    %1 = vector.shape_cast %0 : vector<1x8x32xbf16> to vector<8x32xbf16>
    %c0_2 = arith.constant 0 : index
    %c0_3 = arith.constant 0 : index
    %2 = vector.load %arg2[%c0_2, %c0_3] : memref<32x96xbf16, #tpu.memory_space<vmem>>, vector<32x96xbf16>
    %cst = arith.constant dense<0.000000e+00> : vector<8x96xf32>
    %3 = tpu.matmul %1, %2, %cst {dimension_numbers = #tpu.dot_dimension_numbers<[1], [0], [0], [1], [0, 0, 1, 1], [], []>} : vector<8x32xbf16>, vector<32x96xbf16>, vector<8x96xf32> -> vector<8x96xf32>
    %4 = arith.truncf %3 : vector<8x96xf32> to vector<8x96xbf16>
    %5 = vector.shape_cast %4 : vector<8x96xbf16> to vector<1x8x96xbf16>
    %6 = vector.extract_strided_slice %5 {offsets = [0, 0, 0], sizes = [1, 8, 4], strides = [1, 1, 1]} : vector<1x8x96xbf16> to vector<1x8x4xbf16>
    %7 = vector.extract_strided_slice %5 {offsets = [0, 0, 4], sizes = [1, 8, 4], strides = [1, 1, 1]} : vector<1x8x96xbf16> to vector<1x8x4xbf16>
    %8 = vector.extract_strided_slice %5 {offsets = [0, 0, 8], sizes = [1, 8, 4], strides = [1, 1, 1]} : vector<1x8x96xbf16> to vector<1x8x4xbf16>
    %9 = vector.extract_strided_slice %5 {offsets = [0, 0, 12], sizes = [1, 8, 4], strides = [1, 1, 1]} : vector<1x8x96xbf16> to vector<1x8x4xbf16>
    %10 = vector.extract_strided_slice %5 {offsets = [0, 0, 16], sizes = [1, 8, 4], strides = [1, 1, 1]} : vector<1x8x96xbf16> to vector<1x8x4xbf16>
    %11 = vector.extract_strided_slice %5 {offsets = [0, 0, 20], sizes = [1, 8, 4], strides = [1, 1, 1]} : vector<1x8x96xbf16> to vector<1x8x4xbf16>
    %12 = vector.extract_strided_slice %5 {offsets = [0, 0, 24], sizes = [1, 8, 4], strides = [1, 1, 1]} : vector<1x8x96xbf16> to vector<1x8x4xbf16>
    %13 = vector.extract_strided_slice %5 {offsets = [0, 0, 28], sizes = [1, 8, 4], strides = [1, 1, 1]} : vector<1x8x96xbf16> to vector<1x8x4xbf16>
    %14 = vector.shape_cast %6 : vector<1x8x4xbf16> to vector<1x1x8x4xbf16>
    %15 = vector.shape_cast %7 : vector<1x8x4xbf16> to vector<1x1x8x4xbf16>
    %16 = vector.shape_cast %8 : vector<1x8x4xbf16> to vector<1x1x8x4xbf16>
    %17 = vector.shape_cast %9 : vector<1x8x4xbf16> to vector<1x1x8x4xbf16>
    %18 = vector.shape_cast %10 : vector<1x8x4xbf16> to vector<1x1x8x4xbf16>
    %19 = vector.shape_cast %11 : vector<1x8x4xbf16> to vector<1x1x8x4xbf16>
    %20 = vector.shape_cast %12 : vector<1x8x4xbf16> to vector<1x1x8x4xbf16>
    %21 = vector.shape_cast %13 : vector<1x8x4xbf16> to vector<1x1x8x4xbf16>
    %22 = tpu.concatenate %14, %15, %16, %17, %18, %19, %20, %21 in 0 : vector<1x1x8x4xbf16>, vector<1x1x8x4xbf16>, vector<1x1x8x4xbf16>, vector<1x1x8x4xbf16>, vector<1x1x8x4xbf16>, vector<1x1x8x4xbf16>, vector<1x1x8x4xbf16>, vector<1x1x8x4xbf16> -> vector<8x1x8x4xbf16>
    %23 = vector.extract_strided_slice %5 {offsets = [0, 0, 32], sizes = [1, 8, 4], strides = [1, 1, 1]} : vector<1x8x96xbf16> to vector<1x8x4xbf16>
    %24 = vector.extract_strided_slice %5 {offsets = [0, 0, 36], sizes = [1, 8, 4], strides = [1, 1, 1]} : vector<1x8x96xbf16> to vector<1x8x4xbf16>
    %25 = vector.extract_strided_slice %5 {offsets = [0, 0, 40], sizes = [1, 8, 4], strides = [1, 1, 1]} : vector<1x8x96xbf16> to vector<1x8x4xbf16>
    %26 = vector.extract_strided_slice %5 {offsets = [0, 0, 44], sizes = [1, 8, 4], strides = [1, 1, 1]} : vector<1x8x96xbf16> to vector<1x8x4xbf16>
    %27 = vector.extract_strided_slice %5 {offsets = [0, 0, 48], sizes = [1, 8, 4], strides = [1, 1, 1]} : vector<1x8x96xbf16> to vector<1x8x4xbf16>
    %28 = vector.extract_strided_slice %5 {offsets = [0, 0, 52], sizes = [1, 8, 4], strides = [1, 1, 1]} : vector<1x8x96xbf16> to vector<1x8x4xbf16>
    %29 = vector.extract_strided_slice %5 {offsets = [0, 0, 56], sizes = [1, 8, 4], strides = [1, 1, 1]} : vector<1x8x96xbf16> to vector<1x8x4xbf16>
    %30 = vector.extract_strided_slice %5 {offsets = [0, 0, 60], sizes = [1, 8, 4], strides = [1, 1, 1]} : vector<1x8x96xbf16> to vector<1x8x4xbf16>
    %31 = vector.shape_cast %23 : vector<1x8x4xbf16> to vector<1x1x8x4xbf16>
    %32 = vector.shape_cast %24 : vector<1x8x4xbf16> to vector<1x1x8x4xbf16>
    %33 = vector.shape_cast %25 : vector<1x8x4xbf16> to vector<1x1x8x4xbf16>
    %34 = vector.shape_cast %26 : vector<1x8x4xbf16> to vector<1x1x8x4xbf16>
    %35 = vector.shape_cast %27 : vector<1x8x4xbf16> to vector<1x1x8x4xbf16>
    %36 = vector.shape_cast %28 : vector<1x8x4xbf16> to vector<1x1x8x4xbf16>
    %37 = vector.shape_cast %29 : vector<1x8x4xbf16> to vector<1x1x8x4xbf16>
    %38 = vector.shape_cast %30 : vector<1x8x4xbf16> to vector<1x1x8x4xbf16>
    %39 = tpu.concatenate %31, %32, %33, %34, %35, %36, %37, %38 in 0 : vector<1x1x8x4xbf16>, vector<1x1x8x4xbf16>, vector<1x1x8x4xbf16>, vector<1x1x8x4xbf16>, vector<1x1x8x4xbf16>, vector<1x1x8x4xbf16>, vector<1x1x8x4xbf16>, vector<1x1x8x4xbf16> -> vector<8x1x8x4xbf16>
    %40 = vector.extract_strided_slice %5 {offsets = [0, 0, 64], sizes = [1, 8, 4], strides = [1, 1, 1]} : vector<1x8x96xbf16> to vector<1x8x4xbf16>
    %41 = vector.extract_strided_slice %5 {offsets = [0, 0, 68], sizes = [1, 8, 4], strides = [1, 1, 1]} : vector<1x8x96xbf16> to vector<1x8x4xbf16>
    %42 = vector.extract_strided_slice %5 {offsets = [0, 0, 72], sizes = [1, 8, 4], strides = [1, 1, 1]} : vector<1x8x96xbf16> to vector<1x8x4xbf16>
    %43 = vector.extract_strided_slice %5 {offsets = [0, 0, 76], sizes = [1, 8, 4], strides = [1, 1, 1]} : vector<1x8x96xbf16> to vector<1x8x4xbf16>
    %44 = vector.extract_strided_slice %5 {offsets = [0, 0, 80], sizes = [1, 8, 4], strides = [1, 1, 1]} : vector<1x8x96xbf16> to vector<1x8x4xbf16>
    %45 = vector.extract_strided_slice %5 {offsets = [0, 0, 84], sizes = [1, 8, 4], strides = [1, 1, 1]} : vector<1x8x96xbf16> to vector<1x8x4xbf16>
    %46 = vector.extract_strided_slice %5 {offsets = [0, 0, 88], sizes = [1, 8, 4], strides = [1, 1, 1]} : vector<1x8x96xbf16> to vector<1x8x4xbf16>
    %47 = vector.extract_strided_slice %5 {offsets = [0, 0, 92], sizes = [1, 8, 4], strides = [1, 1, 1]} : vector<1x8x96xbf16> to vector<1x8x4xbf16>
    %48 = vector.shape_cast %40 : vector<1x8x4xbf16> to vector<1x1x8x4xbf16>
    %49 = vector.shape_cast %41 : vector<1x8x4xbf16> to vector<1x1x8x4xbf16>
    %50 = vector.shape_cast %42 : vector<1x8x4xbf16> to vector<1x1x8x4xbf16>
    %51 = vector.shape_cast %43 : vector<1x8x4xbf16> to vector<1x1x8x4xbf16>
    %52 = vector.shape_cast %44 : vector<1x8x4xbf16> to vector<1x1x8x4xbf16>
    %53 = vector.shape_cast %45 : vector<1x8x4xbf16> to vector<1x1x8x4xbf16>
    %54 = vector.shape_cast %46 : vector<1x8x4xbf16> to vector<1x1x8x4xbf16>
    %55 = vector.shape_cast %47 : vector<1x8x4xbf16> to vector<1x1x8x4xbf16>
    %56 = tpu.concatenate %48, %49, %50, %51, %52, %53, %54, %55 in 0 : vector<1x1x8x4xbf16>, vector<1x1x8x4xbf16>, vector<1x1x8x4xbf16>, vector<1x1x8x4xbf16>, vector<1x1x8x4xbf16>, vector<1x1x8x4xbf16>, vector<1x1x8x4xbf16>, vector<1x1x8x4xbf16> -> vector<8x1x8x4xbf16>
    %57 = vector.shape_cast %22 : vector<8x1x8x4xbf16> to vector<8x8x4xbf16>
    %58 = vector.shape_cast %39 : vector<8x1x8x4xbf16> to vector<8x8x4xbf16>
    %59 = vector.shape_cast %56 : vector<8x1x8x4xbf16> to vector<8x8x4xbf16>
    "tpu.trace_start"() <{level = 10 : i32, message = "bqd,bkd->bqk"}> : () -> ()
    %cst_4 = arith.constant dense<0.000000e+00> : vector<8x8x8xf32>
    %60 = tpu.matmul %57, %58, %cst_4 {dimension_numbers = #tpu.dot_dimension_numbers<[2], [2], [1], [1], [0, 0, 0, 1, 1, 1], [0], [0]>} : vector<8x8x4xbf16>, vector<8x8x4xbf16>, vector<8x8x8xf32> -> vector<8x8x8xf32>
    "tpu.trace_stop"() : () -> ()
    %cst_5 = arith.constant dense<0xFF800000> : vector<8x8xf32>
    %61 = vector.multi_reduction <maximumf>, %60, %cst_5 [2] : vector<8x8x8xf32> to vector<8x8xf32>
    %62 = vector.shape_cast %61 : vector<8x8xf32> to vector<8x8x1xf32>
    %63 = vector.broadcast %62 : vector<8x8x1xf32> to vector<8x8x8xf32>
    %64 = arith.subf %60, %63 : vector<8x8x8xf32>
    %65 = math.exp %64 : vector<8x8x8xf32>
    %cst_6 = arith.constant dense<0.000000e+00> : vector<8x8xf32>
    %66 = vector.multi_reduction <add>, %65, %cst_6 [2] : vector<8x8x8xf32> to vector<8x8xf32>
    %67 = vector.shape_cast %66 : vector<8x8xf32> to vector<8x8x1xf32>
    %68 = tpu.reciprocal %67 {approx = true} : vector<8x8x1xf32> -> vector<8x8x1xf32>
    %69 = vector.broadcast %68 : vector<8x8x1xf32> to vector<8x8x8xf32>
    %70 = arith.mulf %65, %69 : vector<8x8x8xf32>
    %71 = arith.truncf %70 : vector<8x8x8xf32> to vector<8x8x8xbf16>
    "tpu.trace_start"() <{level = 10 : i32, message = "bqk,bkd->bqd"}> : () -> ()
    %cst_7 = arith.constant dense<0.000000e+00> : vector<8x8x4xf32>
    %72 = tpu.matmul %71, %59, %cst_7 {dimension_numbers = #tpu.dot_dimension_numbers<[2], [1], [1], [2], [0, 0, 0, 1, 1, 2], [0], [0]>} : vector<8x8x8xbf16>, vector<8x8x4xbf16>, vector<8x8x4xf32> -> vector<8x8x4xf32>
    "tpu.trace_stop"() : () -> ()
    %73 = arith.truncf %72 : vector<8x8x4xf32> to vector<8x8x4xbf16>
    %74 = vector.shape_cast %73 : vector<8x8x4xbf16> to vector<8x1x8x4xbf16>
    %75 = vector.extract_strided_slice %74 {offsets = [0, 0, 0, 0], sizes = [1, 1, 8, 4], strides = [1, 1, 1, 1]} : vector<8x1x8x4xbf16> to vector<1x1x8x4xbf16>
    %76 = vector.shape_cast %75 : vector<1x1x8x4xbf16> to vector<1x8x4xbf16>
    %77 = vector.extract_strided_slice %74 {offsets = [1, 0, 0, 0], sizes = [1, 1, 8, 4], strides = [1, 1, 1, 1]} : vector<8x1x8x4xbf16> to vector<1x1x8x4xbf16>
    %78 = vector.shape_cast %77 : vector<1x1x8x4xbf16> to vector<1x8x4xbf16>
    %79 = vector.extract_strided_slice %74 {offsets = [2, 0, 0, 0], sizes = [1, 1, 8, 4], strides = [1, 1, 1, 1]} : vector<8x1x8x4xbf16> to vector<1x1x8x4xbf16>
    %80 = vector.shape_cast %79 : vector<1x1x8x4xbf16> to vector<1x8x4xbf16>
    %81 = vector.extract_strided_slice %74 {offsets = [3, 0, 0, 0], sizes = [1, 1, 8, 4], strides = [1, 1, 1, 1]} : vector<8x1x8x4xbf16> to vector<1x1x8x4xbf16>
    %82 = vector.shape_cast %81 : vector<1x1x8x4xbf16> to vector<1x8x4xbf16>
    %83 = vector.extract_strided_slice %74 {offsets = [4, 0, 0, 0], sizes = [1, 1, 8, 4], strides = [1, 1, 1, 1]} : vector<8x1x8x4xbf16> to vector<1x1x8x4xbf16>
    %84 = vector.shape_cast %83 : vector<1x1x8x4xbf16> to vector<1x8x4xbf16>
    %85 = vector.extract_strided_slice %74 {offsets = [5, 0, 0, 0], sizes = [1, 1, 8, 4], strides = [1, 1, 1, 1]} : vector<8x1x8x4xbf16> to vector<1x1x8x4xbf16>
    %86 = vector.shape_cast %85 : vector<1x1x8x4xbf16> to vector<1x8x4xbf16>
    %87 = vector.extract_strided_slice %74 {offsets = [6, 0, 0, 0], sizes = [1, 1, 8, 4], strides = [1, 1, 1, 1]} : vector<8x1x8x4xbf16> to vector<1x1x8x4xbf16>
    %88 = vector.shape_cast %87 : vector<1x1x8x4xbf16> to vector<1x8x4xbf16>
    %89 = vector.extract_strided_slice %74 {offsets = [7, 0, 0, 0], sizes = [1, 1, 8, 4], strides = [1, 1, 1, 1]} : vector<8x1x8x4xbf16> to vector<1x1x8x4xbf16>
    %90 = vector.shape_cast %89 : vector<1x1x8x4xbf16> to vector<1x8x4xbf16>
    %91 = tpu.concatenate %76, %78, %80, %82, %84, %86, %88, %90 in 2 : vector<1x8x4xbf16>, vector<1x8x4xbf16>, vector<1x8x4xbf16>, vector<1x8x4xbf16>, vector<1x8x4xbf16>, vector<1x8x4xbf16>, vector<1x8x4xbf16>, vector<1x8x4xbf16> -> vector<1x8x32xbf16>
    %92 = vector.shape_cast %91 : vector<1x8x32xbf16> to vector<8x32xbf16>
    %c0_8 = arith.constant 0 : index
    %c0_9 = arith.constant 0 : index
    %93 = vector.load %arg3[%c0_8, %c0_9] : memref<32x32xbf16, #tpu.memory_space<vmem>>, vector<32x32xbf16>
    %cst_10 = arith.constant dense<0.000000e+00> : vector<8x32xf32>
    %94 = tpu.matmul %92, %93, %cst_10 {dimension_numbers = #tpu.dot_dimension_numbers<[1], [0], [0], [1], [0, 0, 1, 1], [], []>} : vector<8x32xbf16>, vector<32x32xbf16>, vector<8x32xf32> -> vector<8x32xf32>
    %c0_11 = arith.constant 0 : index
    %c0_12 = arith.constant 0 : index
    %95 = vector.load %arg4[%c0_11, %c0_12] : memref<1x32xf32, #tpu.memory_space<vmem>>, vector<1x32xf32>
    %96 = vector.broadcast %95 : vector<1x32xf32> to vector<8x32xf32>
    %97 = arith.addf %94, %96 : vector<8x32xf32>
    %98 = vector.shape_cast %97 : vector<8x32xf32> to vector<1x8x32xf32>
    %c0_13 = arith.constant 0 : index
    %c0_14 = arith.constant 0 : index
    %c0_15 = arith.constant 0 : index
    %99 = vector.load %arg5[%c0_13, %c0_14, %c0_15] : memref<1x8x32xf32, #tpu.memory_space<vmem>>, vector<1x8x32xf32>
    tpu.vector_store %arg5[%c0_13, %c0_14, %c0_15], %98 {strides = array<i32>} : memref<1x8x32xf32, #tpu.memory_space<vmem>>, vector<1x8x32xf32>,
    return
  }
  func.func @transform_0(%arg0: i32) -> (i32, i32, i32) {
    %c0_i32 = arith.constant 0 : i32
    %c0_i32_0 = arith.constant 0 : i32
    %c0_i32_1 = arith.constant 0 : i32
    return %arg0, %c0_i32, %c0_i32_0 : i32, i32, i32
  }
  func.func @transform_1(%arg0: i32) -> (i32, i32) {
    %c0_i32 = arith.constant 0 : i32
    %c0_i32_0 = arith.constant 0 : i32
    %c0_i32_1 = arith.constant 0 : i32
    return %c0_i32, %c0_i32_0 : i32, i32
  }
  func.func @transform_2(%arg0: i32) -> (i32, i32) {
    %c0_i32 = arith.constant 0 : i32
    %c0_i32_0 = arith.constant 0 : i32
    %c0_i32_1 = arith.constant 0 : i32
    return %c0_i32, %c0_i32_0 : i32, i32
  }
  func.func @transform_3(%arg0: i32) -> (i32, i32) {
    %c0_i32 = arith.constant 0 : i32
    %c0_i32_0 = arith.constant 0 : i32
    %c0_i32_1 = arith.constant 0 : i32
    return %c0_i32, %c0_i32_0 : i32, i32
  }
  func.func @transform_4(%arg0: i32) -> (i32, i32, i32) {
    %c0_i32 = arith.constant 0 : i32
    %c0_i32_0 = arith.constant 0 : i32
    %c0_i32_1 = arith.constant 0 : i32
    return %arg0, %c0_i32, %c0_i32_0 : i32, i32, i32
  }
}

module attributes {stable_mosaic.version = 11 : i64} {
  func.func @_attention_kernel(%arg0: i32, %arg1: memref<1x8x32xbf16, #tpu.memory_space<vmem>>, %arg2: memref<32x96xbf16, #tpu.memory_space<vmem>>, %arg3: memref<32x32xbf16, #tpu.memory_space<vmem>>, %arg4: memref<1x32xf32, #tpu.memory_space<vmem>>, %arg5: memref<1x8x32xf32, #tpu.memory_space<vmem>>) attributes {dimension_semantics = [#tpu.dimension_semantics<parallel>], iteration_bounds = array<i64: 2>, scalar_prefetch = 0 : i64, scratch_operands = 0 : i64, tpu.core_type = #tpu.core_type<tc>, window_params = [{transform_indices = @transform_0, window_bounds = array<i64: 1, 8, 32>}, {pipeline_mode = #tpu.pipeline_mode<synchronous>, transform_indices = @transform_1, window_bounds = array<i64: 32, 96>}, {pipeline_mode = #tpu.pipeline_mode<synchronous>, transform_indices = @transform_2, window_bounds = array<i64: 32, 32>}, {pipeline_mode = #tpu.pipeline_mode<synchronous>, transform_indices = @transform_3, window_bounds = array<i64: 1, 32>}, {transform_indices = @transform_4, window_bounds = array<i64: 1, 8, 32>}]} {
    %c0 = arith.constant 0 : index
    %c0_0 = arith.constant 0 : index
    %c0_1 = arith.constant 0 : index
    %0 = vector.load %arg1[%c0, %c0_0, %c0_1] : memref<1x8x32xbf16, #tpu.memory_space<vmem>>, vector<1x8x32xbf16>
    %1 = vector.shape_cast %0 : vector<1x8x32xbf16> to vector<8x32xbf16>
    %c0_2 = arith.constant 0 : index
    %c0_3 = arith.constant 0 : index
    %2 = vector.load %arg2[%c0_2, %c0_3] : memref<32x96xbf16, #tpu.memory_space<vmem>>, vector<32x96xbf16>
    %cst = arith.constant dense<0.000000e+00> : vector<8x96xf32>
    %3 = tpu.matmul %1, %2, %cst {dimension_numbers = #tpu.dot_dimension_numbers<[1], [0], [0], [1], [0, 0, 1, 1], [], []>} : vector<8x32xbf16>, vector<32x96xbf16>, vector<8x96xf32> -> vector<8x96xf32>
    %4 = arith.truncf %3 : vector<8x96xf32> to vector<8x96xbf16>
    %5 = vector.shape_cast %4 : vector<8x96xbf16> to vector<1x8x96xbf16>
    %6 = vector.extract_strided_slice %5 {offsets = [0, 0, 0], sizes = [1, 8, 4], strides = [1, 1, 1]} : vector<1x8x96xbf16> to vector<1x8x4xbf16>
    %7 = vector.extract_strided_slice %5 {offsets = [0, 0, 4], sizes = [1, 8, 4], strides = [1, 1, 1]} : vector<1x8x96xbf16> to vector<1x8x4xbf16>
    %8 = vector.extract_strided_slice %5 {offsets = [0, 0, 8], sizes = [1, 8, 4], strides = [1, 1, 1]} : vector<1x8x96xbf16> to vector<1x8x4xbf16>
    %9 = vector.extract_strided_slice %5 {offsets = [0, 0, 12], sizes = [1, 8, 4], strides = [1, 1, 1]} : vector<1x8x96xbf16> to vector<1x8x4xbf16>
    %10 = vector.extract_strided_slice %5 {offsets = [0, 0, 16], sizes = [1, 8, 4], strides = [1, 1, 1]} : vector<1x8x96xbf16> to vector<1x8x4xbf16>
    %11 = vector.extract_strided_slice %5 {offsets = [0, 0, 20], sizes = [1, 8, 4], strides = [1, 1, 1]} : vector<1x8x96xbf16> to vector<1x8x4xbf16>
    %12 = vector.extract_strided_slice %5 {offsets = [0, 0, 24], sizes = [1, 8, 4], strides = [1, 1, 1]} : vector<1x8x96xbf16> to vector<1x8x4xbf16>
    %13 = vector.extract_strided_slice %5 {offsets = [0, 0, 28], sizes = [1, 8, 4], strides = [1, 1, 1]} : vector<1x8x96xbf16> to vector<1x8x4xbf16>
    %14 = vector.shape_cast %6 : vector<1x8x4xbf16> to vector<1x1x8x4xbf16>
    %15 = vector.shape_cast %7 : vector<1x8x4xbf16> to vector<1x1x8x4xbf16>
    %16 = vector.shape_cast %8 : vector<1x8x4xbf16> to vector<1x1x8x4xbf16>
    %17 = vector.shape_cast %9 : vector<1x8x4xbf16> to vector<1x1x8x4xbf16>
    %18 = vector.shape_cast %10 : vector<1x8x4xbf16> to vector<1x1x8x4xbf16>
    %19 = vector.shape_cast %11 : vector<1x8x4xbf16> to vector<1x1x8x4xbf16>
    %20 = vector.shape_cast %12 : vector<1x8x4xbf16> to vector<1x1x8x4xbf16>
    %21 = vector.shape_cast %13 : vector<1x8x4xbf16> to vector<1x1x8x4xbf16>
    %22 = tpu.concatenate %14, %15, %16, %17, %18, %19, %20, %21 in 0 : vector<1x1x8x4xbf16>, vector<1x1x8x4xbf16>, vector<1x1x8x4xbf16>, vector<1x1x8x4xbf16>, vector<1x1x8x4xbf16>, vector<1x1x8x4xbf16>, vector<1x1x8x4xbf16>, vector<1x1x8x4xbf16> -> vector<8x1x8x4xbf16>
    %23 = vector.extract_strided_slice %5 {offsets = [0, 0, 32], sizes = [1, 8, 4], strides = [1, 1, 1]} : vector<1x8x96xbf16> to vector<1x8x4xbf16>
    %24 = vector.extract_strided_slice %5 {offsets = [0, 0, 36], sizes = [1, 8, 4], strides = [1, 1, 1]} : vector<1x8x96xbf16> to vector<1x8x4xbf16>
    %25 = vector.extract_strided_slice %5 {offsets = [0, 0, 40], sizes = [1, 8, 4], strides = [1, 1, 1]} : vector<1x8x96xbf16> to vector<1x8x4xbf16>
    %26 = vector.extract_strided_slice %5 {offsets = [0, 0, 44], sizes = [1, 8, 4], strides = [1, 1, 1]} : vector<1x8x96xbf16> to vector<1x8x4xbf16>
    %27 = vector.extract_strided_slice %5 {offsets = [0, 0, 48], sizes = [1, 8, 4], strides = [1, 1, 1]} : vector<1x8x96xbf16> to vector<1x8x4xbf16>
    %28 = vector.extract_strided_slice %5 {offsets = [0, 0, 52], sizes = [1, 8, 4], strides = [1, 1, 1]} : vector<1x8x96xbf16> to vector<1x8x4xbf16>
    %29 = vector.extract_strided_slice %5 {offsets = [0, 0, 56], sizes = [1, 8, 4], strides = [1, 1, 1]} : vector<1x8x96xbf16> to vector<1x8x4xbf16>
    %30 = vector.extract_strided_slice %5 {offsets = [0, 0, 60], sizes = [1, 8, 4], strides = [1, 1, 1]} : vector<1x8x96xbf16> to vector<1x8x4xbf16>
    %31 = vector.shape_cast %23 : vector<1x8x4xbf16> to vector<1x1x8x4xbf16>
    %32 = vector.shape_cast %24 : vector<1x8x4xbf16> to vector<1x1x8x4xbf16>
    %33 = vector.shape_cast %25 : vector<1x8x4xbf16> to vector<1x1x8x4xbf16>
    %34 = vector.shape_cast %26 : vector<1x8x4xbf16> to vector<1x1x8x4xbf16>
    %35 = vector.shape_cast %27 : vector<1x8x4xbf16> to vector<1x1x8x4xbf16>
    %36 = vector.shape_cast %28 : vector<1x8x4xbf16> to vector<1x1x8x4xbf16>
    %37 = vector.shape_cast %29 : vector<1x8x4xbf16> to vector<1x1x8x4xbf16>
    %38 = vector.shape_cast %30 : vector<1x8x4xbf16> to vector<1x1x8x4xbf16>
    %39 = tpu.concatenate %31, %32, %33, %34, %35, %36, %37, %38 in 0 : vector<1x1x8x4xbf16>, vector<1x1x8x4xbf16>, vector<1x1x8x4xbf16>, vector<1x1x8x4xbf16>, vector<1x1x8x4xbf16>, vector<1x1x8x4xbf16>, vector<1x1x8x4xbf16>, vector<1x1x8x4xbf16> -> vector<8x1x8x4xbf16>
    %40 = vector.extract_strided_slice %5 {offsets = [0, 0, 64], sizes = [1, 8, 4], strides = [1, 1, 1]} : vector<1x8x96xbf16> to vector<1x8x4xbf16>
    %41 = vector.extract_strided_slice %5 {offsets = [0, 0, 68], sizes = [1, 8, 4], strides = [1, 1, 1]} : vector<1x8x96xbf16> to vector<1x8x4xbf16>
    %42 = vector.extract_strided_slice %5 {offsets = [0, 0, 72], sizes = [1, 8, 4], strides = [1, 1, 1]} : vector<1x8x96xbf16> to vector<1x8x4xbf16>
    %43 = vector.extract_strided_slice %5 {offsets = [0, 0, 76], sizes = [1, 8, 4], strides = [1, 1, 1]} : vector<1x8x96xbf16> to vector<1x8x4xbf16>
    %44 = vector.extract_strided_slice %5 {offsets = [0, 0, 80], sizes = [1, 8, 4], strides = [1, 1, 1]} : vector<1x8x96xbf16> to vector<1x8x4xbf16>
    %45 = vector.extract_strided_slice %5 {offsets = [0, 0, 84], sizes = [1, 8, 4], strides = [1, 1, 1]} : vector<1x8x96xbf16> to vector<1x8x4xbf16>
    %46 = vector.extract_strided_slice %5 {offsets = [0, 0, 88], sizes = [1, 8, 4], strides = [1, 1, 1]} : vector<1x8x96xbf16> to vector<1x8x4xbf16>
    %47 = vector.extract_strided_slice %5 {offsets = [0, 0, 92], sizes = [1, 8, 4], strides = [1, 1, 1]} : vector<1x8x96xbf16> to vector<1x8x4xbf16>
    %48 = vector.shape_cast %40 : vector<1x8x4xbf16> to vector<1x1x8x4xbf16>
    %49 = vector.shape_cast %41 : vector<1x8x4xbf16> to vector<1x1x8x4xbf16>
    %50 = vector.shape_cast %42 : vector<1x8x4xbf16> to vector<1x1x8x4xbf16>
    %51 = vector.shape_cast %43 : vector<1x8x4xbf16> to vector<1x1x8x4xbf16>
    %52 = vector.shape_cast %44 : vector<1x8x4xbf16> to vector<1x1x8x4xbf16>
    %53 = vector.shape_cast %45 : vector<1x8x4xbf16> to vector<1x1x8x4xbf16>
    %54 = vector.shape_cast %46 : vector<1x8x4xbf16> to vector<1x1x8x4xbf16>
    %55 = vector.shape_cast %47 : vector<1x8x4xbf16> to vector<1x1x8x4xbf16>
    %56 = tpu.concatenate %48, %49, %50, %51, %52, %53, %54, %55 in 0 : vector<1x1x8x4xbf16>, vector<1x1x8x4xbf16>, vector<1x1x8x4xbf16>, vector<1x1x8x4xbf16>, vector<1x1x8x4xbf16>, vector<1x1x8x4xbf16>, vector<1x1x8x4xbf16>, vector<1x1x8x4xbf16> -> vector<8x1x8x4xbf16>
    %57 = vector.shape_cast %22 : vector<8x1x8x4xbf16> to vector<8x8x4xbf16>
    %58 = vector.shape_cast %39 : vector<8x1x8x4xbf16> to vector<8x8x4xbf16>
    %59 = vector.shape_cast %56 : vector<8x1x8x4xbf16> to vector<8x8x4xbf16>
    "tpu.trace_start"() <{level = 10 : i32, message = "bqd,bkd->bqk"}> : () -> ()
    %cst_4 = arith.constant dense<0.000000e+00> : vector<8x8x8xf32>
    %60 = tpu.matmul %57, %58, %cst_4 {dimension_numbers = #tpu.dot_dimension_numbers<[2], [2], [1], [1], [0, 0, 0, 1, 1, 1], [0], [0]>} : vector<8x8x4xbf16>, vector<8x8x4xbf16>, vector<8x8x8xf32> -> vector<8x8x8xf32>
    "tpu.trace_stop"() : () -> ()
    %cst_5 = arith.constant dense<0xFF800000> : vector<8x8xf32>
    %61 = vector.multi_reduction <maximumf>, %60, %cst_5 [2] : vector<8x8x8xf32> to vector<8x8xf32>
    %62 = vector.shape_cast %61 : vector<8x8xf32> to vector<8x8x1xf32>
    %63 = vector.broadcast %62 : vector<8x8x1xf32> to vector<8x8x8xf32>
    %64 = arith.subf %60, %63 : vector<8x8x8xf32>
    %65 = math.exp %64 : vector<8x8x8xf32>
    %cst_6 = arith.constant dense<0.000000e+00> : vector<8x8xf32>
    %66 = vector.multi_reduction <add>, %65, %cst_6 [2] : vector<8x8x8xf32> to vector<8x8xf32>
    %67 = vector.shape_cast %66 : vector<8x8xf32> to vector<8x8x1xf32>
    %68 = tpu.reciprocal %67 {approx = true} : vector<8x8x1xf32> -> vector<8x8x1xf32>
    %69 = vector.broadcast %68 : vector<8x8x1xf32> to vector<8x8x8xf32>
    %70 = arith.mulf %65, %69 : vector<8x8x8xf32>
    %71 = arith.truncf %70 : vector<8x8x8xf32> to vector<8x8x8xbf16>
    "tpu.trace_start"() <{level = 10 : i32, message = "bqk,bkd->bqd"}> : () -> ()
    %cst_7 = arith.constant dense<0.000000e+00> : vector<8x8x4xf32>
    %72 = tpu.matmul %71, %59, %cst_7 {dimension_numbers = #tpu.dot_dimension_numbers<[2], [1], [1], [2], [0, 0, 0, 1, 1, 2], [0], [0]>} : vector<8x8x8xbf16>, vector<8x8x4xbf16>, vector<8x8x4xf32> -> vector<8x8x4xf32>
    "tpu.trace_stop"() : () -> ()
    %73 = arith.truncf %72 : vector<8x8x4xf32> to vector<8x8x4xbf16>
    %74 = vector.shape_cast %73 : vector<8x8x4xbf16> to vector<8x1x8x4xbf16>
    %75 = vector.extract_strided_slice %74 {offsets = [0, 0, 0, 0], sizes = [1, 1, 8, 4], strides = [1, 1, 1, 1]} : vector<8x1x8x4xbf16> to vector<1x1x8x4xbf16>
    %76 = vector.shape_cast %75 : vector<1x1x8x4xbf16> to vector<1x8x4xbf16>
    %77 = vector.extract_strided_slice %74 {offsets = [1, 0, 0, 0], sizes = [1, 1, 8, 4], strides = [1, 1, 1, 1]} : vector<8x1x8x4xbf16> to vector<1x1x8x4xbf16>
    %78 = vector.shape_cast %77 : vector<1x1x8x4xbf16> to vector<1x8x4xbf16>
    %79 = vector.extract_strided_slice %74 {offsets = [2, 0, 0, 0], sizes = [1, 1, 8, 4], strides = [1, 1, 1, 1]} : vector<8x1x8x4xbf16> to vector<1x1x8x4xbf16>
    %80 = vector.shape_cast %79 : vector<1x1x8x4xbf16> to vector<1x8x4xbf16>
    %81 = vector.extract_strided_slice %74 {offsets = [3, 0, 0, 0], sizes = [1, 1, 8, 4], strides = [1, 1, 1, 1]} : vector<8x1x8x4xbf16> to vector<1x1x8x4xbf16>
    %82 = vector.shape_cast %81 : vector<1x1x8x4xbf16> to vector<1x8x4xbf16>
    %83 = vector.extract_strided_slice %74 {offsets = [4, 0, 0, 0], sizes = [1, 1, 8, 4], strides = [1, 1, 1, 1]} : vector<8x1x8x4xbf16> to vector<1x1x8x4xbf16>
    %84 = vector.shape_cast %83 : vector<1x1x8x4xbf16> to vector<1x8x4xbf16>
    %85 = vector.extract_strided_slice %74 {offsets = [5, 0, 0, 0], sizes = [1, 1, 8, 4], strides = [1, 1, 1, 1]} : vector<8x1x8x4xbf16> to vector<1x1x8x4xbf16>
    %86 = vector.shape_cast %85 : vector<1x1x8x4xbf16> to vector<1x8x4xbf16>
    %87 = vector.extract_strided_slice %74 {offsets = [6, 0, 0, 0], sizes = [1, 1, 8, 4], strides = [1, 1, 1, 1]} : vector<8x1x8x4xbf16> to vector<1x1x8x4xbf16>
    %88 = vector.shape_cast %87 : vector<1x1x8x4xbf16> to vector<1x8x4xbf16>
    %89 = vector.extract_strided_slice %74 {offsets = [7, 0, 0, 0], sizes = [1, 1, 8, 4], strides = [1, 1, 1, 1]} : vector<8x1x8x4xbf16> to vector<1x1x8x4xbf16>
    %90 = vector.shape_cast %89 : vector<1x1x8x4xbf16> to vector<1x8x4xbf16>
    %91 = tpu.concatenate %76, %78, %80, %82, %84, %86, %88, %90 in 2 : vector<1x8x4xbf16>, vector<1x8x4xbf16>, vector<1x8x4xbf16>, vector<1x8x4xbf16>, vector<1x8x4xbf16>, vector<1x8x4xbf16>, vector<1x8x4xbf16>, vector<1x8x4xbf16> -> vector<1x8x32xbf16>
    %92 = vector.shape_cast %91 : vector<1x8x32xbf16> to vector<8x32xbf16>
    %c0_8 = arith.constant 0 : index
    %c0_9 = arith.constant 0 : index
    %93 = vector.load %arg3[%c0_8, %c0_9] : memref<32x32xbf16, #tpu.memory_space<vmem>>, vector<32x32xbf16>
    %cst_10 = arith.constant dense<0.000000e+00> : vector<8x32xf32>
    %94 = tpu.matmul %92, %93, %cst_10 {dimension_numbers = #tpu.dot_dimension_numbers<[1], [0], [0], [1], [0, 0, 1, 1], [], []>} : vector<8x32xbf16>, vector<32x32xbf16>, vector<8x32xf32> -> vector<8x32xf32>
    %c0_11 = arith.constant 0 : index
    %c0_12 = arith.constant 0 : index
    %95 = vector.load %arg4[%c0_11, %c0_12] : memref<1x32xf32, #tpu.memory_space<vmem>>, vector<1x32xf32>
    %96 = vector.broadcast %95 : vector<1x32xf32> to vector<8x32xf32>
    %97 = arith.addf %94, %96 : vector<8x32xf32>
    %98 = vector.shape_cast %97 : vector<8x32xf32> to vector<1x8x32xf32>
    %c0_13 = arith.constant 0 : index
    %c0_14 = arith.constant 0 : index
    %c0_15 = arith.constant 0 : index
    %99 = vector.load %arg5[%c0_13, %c0_14, %c0_15] : memref<1x8x32xf32, #tpu.memory_space<vmem>>, vector<1x8x32xf32>
    tpu.vector_store %arg5[%c0_13, %c0_14, %c0_15], %98 {strides = array<i32>} : memref<1x8x32xf32, #tpu.memory_space<vmem>>, vector<1x8x32xf32>,
    return
  }
  func.func @transform_0(%arg0: i32) -> (i32, i32, i32) {
    %c0_i32 = arith.constant 0 : i32
    %c0_i32_0 = arith.constant 0 : i32
    %c0_i32_1 = arith.constant 0 : i32
    return %arg0, %c0_i32, %c0_i32_0 : i32, i32, i32
  }
  func.func @transform_1(%arg0: i32) -> (i32, i32) {
    %c0_i32 = arith.constant 0 : i32
    %c0_i32_0 = arith.constant 0 : i32
    %c0_i32_1 = arith.constant 0 : i32
    return %c0_i32, %c0_i32_0 : i32, i32
  }
  func.func @transform_2(%arg0: i32) -> (i32, i32) {
    %c0_i32 = arith.constant 0 : i32
    %c0_i32_0 = arith.constant 0 : i32
    %c0_i32_1 = arith.constant 0 : i32
    return %c0_i32, %c0_i32_0 : i32, i32
  }
  func.func @transform_3(%arg0: i32) -> (i32, i32) {
    %c0_i32 = arith.constant 0 : i32
    %c0_i32_0 = arith.constant 0 : i32
    %c0_i32_1 = arith.constant 0 : i32
    return %c0_i32, %c0_i32_0 : i32, i32
  }
  func.func @transform_4(%arg0: i32) -> (i32, i32, i32) {
    %c0_i32 = arith.constant 0 : i32
    %c0_i32_0 = arith.constant 0 : i32
    %c0_i32_1 = arith.constant 0 : i32
    return %arg0, %c0_i32, %c0_i32_0 : i32, i32, i32
  }
}

</mosaic_0001>

<bundles_post_ra>
// kernel: tpu_custom_call.1
= control target key start
LH: loop header
LB: loop body
LE: loop exit
PB: predicated region body
PF: predicated region fallthrough
CT: control target
= control target key end

     0   :  { %9 = vsyncpa [#allocation3], 0  ;;  %s2365_s0 = inlined_call_operand.hbm [shape: bf16[2,8,32], index: 0, kind: input, shape index: {}]   ;;  %s2366_s1 = inlined_call_operand.hbm [shape: bf16[32,96], index: 1, kind: input, shape index: {}]   ;;  %s2367_s2 = inlined_call_operand.hbm [shape: bf16[32,32], index: 2, kind: input, shape index: {}]   ;;  %s2368_s3 = inlined_call_operand.vmem [shape: f32[1,32], index: 3, kind: input, shape index: {}]   ;;  %s2369_s4 = inlined_call_operand.hbm [shape: f32[2,8,32], index: 4, kind: output, shape index: {}]  }
   0x1   :  { %11 = vsyncpa [#allocation3 + $0x1], 0 }
   0x2   :  { %12 = vsyncpa [#allocation6], 0 }
   0x3   :  { %13 = vsyncpa [#allocation4], 0 }
   0x4   :  { %15 = vsyncpa [#allocation4 + $0x1], 0  ;;  %s1924_s15 = smov 0   ;;  %s1926_s16 = smov 0  }
   0x5   :  { %s1928_s17 = smov 0   ;;  %s1930_s18 = smov 0  }
   0x6 LB: > { %s1945_s19 = sadd.s32 4294967295, %s1873_s18   ;;  %s1405_s20 = sadd.s32 4294967294, %s1873_s18   ;;  %s1873_s18 = sphi %s1930_s18, %s2389_s18   ;;  %s1869_s17 = sphi %s1928_s17, %s2388_s17   ;;  %s1865_s16 = sphi %s1926_s16, %s2387_s16   ;;  %s1861_s15 = sphi %s1924_s15, %s2386_s15  }
   0x7   : > { %p41_p0 = scmp.ne.s32.totalorder %s1865_s16, %s1861_s15  ;;  %p2370_p1 = scmp.eq.s32.totalorder %s1945_s19, 0 }
   0x8   : > { %p134_p3 = scmp.eq.s32.totalorder %s1405_s20, 1  ;;  %p1406_p5 = scmp.ge.s32.totalorder %s1873_s18, 1 }
   0x9   : > { %p1954_p4 = por %p2370_p1, %p41_p0  ;;  %p141_p7 = scmp.lt.s32.totalorder %s1873_s18, 3 }
   0xa   : > { %p1959_p6 = por %p134_p3, %p41_p0  ;;  %s1875_s24 = smov [#allocation5]  }
   0xb   : > { %s2373_s21 = scalar_select %p1954_p4, 1, 0 }
   0xc   : > { %s2374_s22 = scalar_select %p1959_p6, 1, 0 }
   0xd   : > { %p1964_p8 = pnand %p1406_p5, %p141_p7  ;;  %s153_s25 = sshll.u32 %s1875_s24, 4  ;;  %s1968_s25 = int_to_ptr.vmem [resolvable:$true] %s153_s25 }
   0xe   : > { %s1876_s27 = smov [#allocation7]   ;;  %s1717_s5 = scalar_lea.hbm %s2366_s1, 256 }
   0xf   : > { %p1606_p9 = pneg %p1964_p8  ;;  %s166_s28 = sshll.u32 %s1876_s27, 4  ;;  %s1979_s28 = int_to_ptr.vmem [resolvable:$true] %s166_s28 }
  0x10   : > { %p1718_p12 = scmp.ne.s32.totalorder %s2366_s1, %s1717_s5  ;;  %p1724_p5 = scmp.lt.u32.totalorder %s1717_s5, %s2366_s1 }
  0x11   : > { %p1975_p11 = pnand %p1606_p9, %p2370_p1 }
  0x13   : > { %p1719_p13 = pneg %p1975_p11 }
  0x15   : > { %p1720_p0 = pnand %p1719_p13, %p1718_p12 }
  0x17   : > { %p1721_p3 = pneg %p1720_p0 }
  0x19   : > { %p1726_p7 = pnand %p1724_p5, %p1721_p3 }
  0x1b   : > { %1729 = shalt.err (!%p1726_p7)
}
  0x1c   : > { %s1730_s10 = scalar_lea.vmem %s1968_s25, 256  ;;  %p1738_p2 = scmp.lt.s32.totalorder %s1968_s25, %s1968_s25 }
  0x1d   : > { %p1731_p9 = scmp.ne.s32.totalorder %s1968_s25, %s1730_s10  ;;  %p1739_p12 = scmp.lt.s32.totalorder %s1730_s10, %s1730_s10 }
  0x1f   : > { %p1733_p10 = pnand %p1731_p9, %p1719_p13  ;;  %p1740_p0 = por %p1739_p12, %p1738_p2 }
  0x21   : > { %p1734_p1 = pneg %p1733_p10 }
  0x23   : > { %p1741_p6 = pnand %p1740_p0, %p1734_p1 }
  0x25   : > { %1744 = shalt.err (!%p1741_p6)
}
  0x26   : > { %s1877_s11 = smov 64   ;;  %s1878_s12 = smov 4  }
  0x27   : > { %1609 = dma.hbm_to_vmem [thread:$0]  (!%p1975_p11), %s2366_s1, 256, %s1968_s25, [#allocation6], %s1877_s11, %s1877_s11, %s1878_s12  }
  0x28   : > { %s1745_s27 = scalar_lea.hbm %s2367_s2, 256 }
  0x29   : > { %p1746_p2 = scmp.ne.s32.totalorder %s2367_s2, %s1745_s27  ;;  %p1752_p10 = scmp.lt.u32.totalorder %s1745_s27, %s2367_s2 }
  0x2b   : > { %p1748_p1 = pnand %p1746_p2, %p1719_p13 }
  0x2d   : > { %p1749_p6 = pneg %p1748_p1 }
  0x2f   : > { %p1754_p3 = pnand %p1752_p10, %p1749_p6 }
  0x31   : > { %1757 = shalt.err (!%p1754_p3)
}
  0x32   : > { %s1758_s25 = scalar_lea.vmem %s1979_s28, 256  ;;  %p1766_p12 = scmp.lt.s32.totalorder %s1979_s28, %s1979_s28 }
  0x33   : > { %p1759_p5 = scmp.ne.s32.totalorder %s1979_s28, %s1758_s25  ;;  %p1767_p0 = scmp.lt.s32.totalorder %s1758_s25, %s1758_s25 }
  0x35   : > { %p1761_p7 = pnand %p1759_p5, %p1719_p13  ;;  %p1768_p2 = por %p1767_p0, %p1766_p12 }
  0x37   : > { %p1762_p9 = pneg %p1761_p7 }
  0x39   : > { %p1769_p1 = pnand %p1768_p2, %p1762_p9 }
  0x3b   : > { %1772 = shalt.err (!%p1769_p1)
}
  0x3c   : > { %1612 = dma.hbm_to_vmem [thread:$0]  (!%p1975_p11), %s2367_s2, 256, %s1979_s28, [#allocation6], %s1877_s11, %s1877_s11, %s1878_s12  }
  0x3d   : > { %s2034_s9 = sadd.s32 1, %s1873_s18   ;;  %s28_s26 = sadd.s32 1, %s1869_s17 }
  0x3e   : > { %s25_s10 = ssub.s32 %s1873_s18, %s2034_s9  ;;  %p35_p13 = scmp.ne.s32.totalorder %s1869_s17, %s1865_s16 }
  0x3f   : > { %p26_p6 = scmp.eq.s32.totalorder %s25_s10, 0  ;;  %p36_p10 = scmp.eq.s32.totalorder %s1873_s18, 0 }
  0x40   : > { %p2377_p3 = scmp.eq.s32.totalorder %s1945_s19, 1  ;;  %p1623_p7 = scmp.lt.s32.totalorder %s1873_s18, 2 }
  0x41   : > { %s2050_s14 = scalar_select %p26_p6, %s1869_s17, %s28_s26  }
  0x42   : > { %p2044_p5 = por %p2377_p3, %p35_p13  ;;  %p37_p9 = por %p36_p10, %p35_p13 }
  0x43   : > { %s183_s20 = sand.u32 1, %s1869_s17   ;;  %s1411_s28 = sshll.u32 %s1873_s18, 6 }
  0x44   : > { %s2378_s13 = scalar_select %p2044_p5, 1, 0 }
  0x45   : > { %s1410_s24 = sshll.u32 %s183_s20, 2  ;;  %s2057_s27 = scalar_lea.hbm %s2365_s0, %s1411_s28 }
  0x46   : > { %s187_s29 = scalar_lea.vmem [#allocation2], %s1410_s24  ;;  %p2061_p11 = pnand %p1623_p7, %p37_p9 }
  0x47   : > { %s194_s30 = sshll.u32 %s187_s29, 4  ;;  %s184_s6 = scalar_lea.sflag [#allocation3], %s183_s20  ;;  %s2059_s30 = int_to_ptr.vmem [resolvable:$true] %s194_s30 }
  0x48   : > { %s1773_s25 = scalar_lea.hbm %s2057_s27, 64  ;;  %p1775_p0 = pneg %p2061_p11 }
  0x49   : > { %p1774_p12 = scmp.ne.s32.totalorder %s2057_s27, %s1773_s25  ;;  %s1778_s26 = scalar_lea.hbm %s2365_s0, 128 }
  0x4a   : > { %p1779_p13 = scmp.lt.u32.totalorder %s2057_s27, %s2365_s0  ;;  %p1780_p6 = scmp.lt.u32.totalorder %s1778_s26, %s1773_s25 }
  0x4b   : > { %p1776_p2 = pnand %p1775_p0, %p1774_p12  ;;  %p1782_p3 = scmp.lt.u32.totalorder %s1773_s25, %s2057_s27 }
  0x4c   : > { %p1781_p10 = por %p1780_p6, %p1779_p13 }
  0x4d   : > { %p1777_p1 = pneg %p1776_p2 }
  0x4e   : > { %p1783_p7 = por %p1782_p3, %p1781_p10 }
  0x50   : > { %p1784_p9 = pnand %p1783_p7, %p1777_p1 }
  0x52   : > { %1787 = shalt.err (!%p1784_p9)
}
  0x53   : > { %s1788_s20 = scalar_lea.vmem %s2059_s30, 64  ;;  %s1879_s28 = smov [#allocation2]  }
  0x54   : > { %p1789_p12 = scmp.ne.s32.totalorder %s2059_s30, %s1788_s20  ;;  %s1793_s11 = sshll.u32 %s1879_s28, 4  ;;  %s1794_s11 = int_to_ptr.vmem [resolvable:$false] %s1793_s11 }
  0x55   : > { %s1795_s12 = scalar_lea.vmem %s1794_s11, 128  ;;  %p1796_p4 = scmp.lt.s32.totalorder %s2059_s30, %s1794_s11 }
  0x56   : > { %p1791_p2 = pnand %p1789_p12, %p1775_p0  ;;  %p1797_p13 = scmp.lt.s32.totalorder %s1795_s12, %s1788_s20 }
  0x58   : > { %p1792_p5 = pneg %p1791_p2  ;;  %p1798_p6 = por %p1797_p13, %p1796_p4 }
  0x5a   : > { %p1799_p10 = pnand %p1798_p6, %p1792_p5 }
  0x5c   : > { %1802 = shalt.err (!%p1799_p10)
}
  0x5d   : > { %1616 = dma.hbm_to_vmem [thread:$0]  (!%p2061_p11), %s2057_s27, 64, %s2059_s30, %s184_s6  }
  0x5e   : > { %203 = sbr.rel (%p1964_p8) target bundleno = 1719 (0x6b7), region = 36  ;;  %s2093_s29 = sand.u32 (!%p1964_p8), 1, %s1865_s16  }
  0x5f   : > { %s1413_s25 = sshll.u32 (!%p1964_p8), %s2093_s29, 2  ;;  %s206_s7 = scalar_lea.sflag (!%p1964_p8), [#allocation3], %s2093_s29 }
  0x60   : > { %s209_s8 = scalar_lea.vmem (!%p1964_p8), [#allocation2], %s1413_s25  ;;  %p2380_p4 = scmp.ne.s32.totalorder (!%p1964_p8), %s2373_s21, 0 }
  0x65   : > { %1848 = dma.done.wait (%p2380_p4), %s206_s7, 64  }
  0x66   : > { %1850 = vsyncadd (%p2380_p4), %s206_s7, 4294967232  ;;  %p2381_p5 = scmp.eq.s32.totalorder %s1945_s19, 0 }
  0x68   : > { %1852 = dma.done.wait (%p2381_p5), [#allocation6], 512   ;;  %p2382_p11 = pmov %p2381_p5 }
  0x69   : > { %v1880_v0 = vmov 0.0   ;;  %vm1881_vm0 = vmmov 0   ;;  %v1681_v1 = vld [vmem:[#allocation5] sm:$0xff]   ;;  %v1682_v2 = vld [vmem:[#allocation5 + $0x8] sm:$0xff]   ;;  %v243_v3 = vld [vmem:[%s209_s8] sm:$0xf] }
  0x6a   : > { %1854 = vsyncadd (%p2382_p11), [#allocation6], 4294966784  ;;  %1482 = vmatprep.subr.bf16.mxu0 %v1880_v0  ;;  %1486 = vmatprep.mubr.msk.bf16.mxu0 %vm1881_vm0, %v1880_v0  ;;  %vm260_vm1 = vcmask 261120   ;;  %s1882_s21 = smov 116   ;;  %s1883_s23 = smov 124   ;;  %vm322_vm2 = vcmask 31744  }
  0x6b   : > { %1490 = vmatprep.subr.bf16.mxu1 %v1880_v0  ;;  %1492 = vmatprep.mubr.msk.bf16.mxu1 %vm1881_vm0, %v1880_v0  ;;  %s1884_s27 = smov 112   ;;  %s1885_s30 = smov 120   ;;  %vm705_vm3 = vcmask 64512   ;;  %vm807_vm4 = vcmask 1043456   ;;  %vm1221_vm5 = vcmask 97280   ;;  %vm1224_vm6 = vcmask 130048  }
  0x6c   : > { %1483 = vmatpush3.bf16.msra.mxu0 %v1681_v1  ;;  %s1886_s5 = smov 104   ;;  %s1887_s6 = smov 108   ;;  %vm1227_vm7 = vcmask 162816   ;;  %vm1230_vm8 = vcmask 195584   ;;  %vm1233_vm9 = vcmask 228352  }
  0x6d   : > { %1484 = vmatprep.subr.bf16.mxu0 %v1880_v0  ;;  %s1888_s26 = smov 96   ;;  %s1889_s10 = smov 100  }
  0x6e   : > { %s1890_s24 = smov 64   ;;  %s1891_s20 = smov 4  }
  0x6f   : > { %s1892_s28 = smov 8   ;;  %s1893_s11 = smov 12  }
  0x70   : > { %1485 = vmatpush3.bf16.msra.mxu0 %v1682_v2  ;;  %s1894_s12 = smov 20   ;;  %s1895_s25 = smov 28  }
  0x71   : > { %1496 = vmatprep.subr.bf16.mxu0 %v1880_v0  ;;  %s1896_s7 = smov 16   ;;  %s1897_s8 = smov 24  }
  0x72   : > { %p2383_p0 = scmp.ne.s32.totalorder %s2378_s13, 0 }
  0x73   : > { %1487 = vmatmul.mubr.msk.bf16.vlgmr.msra.gmra.mrb[0].mxu0 %vm260_vm1, %v243_v3 }
  0x74   : > { %1498 = vmatprep.mubr.msk.bf16.mxu0 %vm1881_vm0, %v1880_v0 }
 0x146   : > { %v298_v4 = vpop.f32.mrb[0].mxu0 }
 0x147   : > { %v2116_v5 = vpack.c.bf16 %v298_v4, %v298_v4  ;;  %v1488_v6 = vpop.f32.mrb[1].mxu0 }
 0x148   : > { %v301_v7 = vpop.f32.mrb[2].mxu0 }
 0x149   : > { %310 = vrot.lane.b32.xlu1 %v2116_v5, %s1882_s21  ;;  %306 = vrot.lane.b32.xlu0 %v2116_v5, %s1883_s23  ;;  %v1489_v8 = vpop.f32.mrb[3].mxu0  ;;  %s1416_s21 = sshll.u32 %s2093_s29, 3 }
 0x14d   : > { %312 = vrot.lane.b32.xlu1 %v2116_v5, %s1884_s27  ;;  %308 = vrot.lane.b32.xlu0 %v2116_v5, %s1885_s30  ;;  %s1441_s30 = sshll.u32 %s1945_s19, 7  ;;  %s1303_s19 = scalar_lea.sflag [#allocation4], %s2093_s29 }
 0x151   : > { %316 = vrot.lane.b32.xlu1 %v2116_v5, %s1886_s5  ;;  %314 = vrot.lane.b32.xlu0 %v2116_v5, %s1887_s6  ;;  %s241_s5 = scalar_lea.vmem [#allocation8], %s1416_s21 }
 0x152   : > { %s1316_s6 = sshll.u32 %s241_s5, 4  ;;  %s2322_s6 = int_to_ptr.vmem [resolvable:$true] %s1316_s6 }
 0x155   : > { %320 = vrot.lane.b32.xlu1 %v2116_v5, %s1888_s26  ;;  %318 = vrot.lane.b32.xlu0 %v2116_v5, %s1889_s10 }
 0x1bb   : > { %v2126_v9 = vpop.permute.xlu1 %310  ;;  %v2128_v10 = vpop.permute.xlu0 %306 }
 0x1bc   : > { %369 = vrot.lane.b32.xlu0 %v2128_v10, %s1888_s26 }
 0x1bf   : > { %v2131_v11 = vpop.permute.xlu1 %312  ;;  %v2133_v12 = vpop.permute.xlu0 %308 }
 0x1c0   : > { %465 = vrot.lane.b32.xlu0 %v2126_v9, %s1888_s26  ;;  %417 = vrot.lane.b32.xlu1 %v2133_v12, %s1888_s26 }
 0x1c3   : > { %v2137_v13 = vpop.permute.xlu1 %316  ;;  %v2139_v14 = vpop.permute.xlu0 %314 }
 0x1c4   : > { %513 = vrot.lane.b32.xlu1 %v2131_v11, %s1888_s26  ;;  %561 = vrot.lane.b32.xlu0 %v2139_v14, %s1888_s26 }
 0x1c7   : > { %v321_v15 = vpop.permute.xlu1 %320  ;;  %v2143_v16 = vpop.permute.xlu0 %318 }
 0x1c8   : > { %609 = vrot.lane.b32.xlu1 %v2137_v13, %s1888_s26  ;;  %657 = vrot.lane.b32.xlu0 %v2143_v16, %s1888_s26  ;;  %v327_v17 = vsel %vm322_vm2, %v321_v15, 0 }
 0x1c9   : > { %1491 = vmatpush3.bf16.xpose.msra.mxu1 %v327_v17 }
 0x1ca   : > { %1502 = vmatprep.subr.bf16.mxu1 %v1880_v0 }
 0x1d0   : > { %1493 = vmatmul.mubr.msk.bf16.vlgmr.msra.gmra.mrb[0].mxu1 %vm322_vm2, %v2116_v5 }
 0x1d1   : > { %1504 = vmatprep.mubr.msk.bf16.mxu1 %vm1881_vm0, %v1880_v0 }
 0x22e   : > { %v370_v18 = vpop.permute.xlu0 %369 }
 0x22f   : > { %v375_v19 = vsel %vm322_vm2, %v370_v18, 0 }
 0x230   : > { %1497 = vmatpush3.bf16.xpose.msra.mxu0 %v375_v19 }
 0x231   : > { %1508 = vmatprep.subr.bf16.mxu0 %v1880_v0 }
 0x232   : > { %v418_v20 = vpop.permute.xlu1 %417  ;;  %v466_v22 = vpop.permute.xlu0 %465 }
 0x233   : > { %v423_v21 = vsel %vm322_vm2, %v418_v20, 0  ;;  %v471_v23 = vsel %vm322_vm2, %v466_v22, 0 }
 0x234   : > { %1503 = vmatpush3.bf16.xpose.msra.mxu1 %v423_v21 }
 0x235   : > { %1514 = vmatprep.subr.bf16.mxu1 %v1880_v0 }
 0x236   : > { %v514_v24 = vpop.permute.xlu1 %513  ;;  %v562_v26 = vpop.permute.xlu0 %561 }
 0x237   : > { %1499 = vmatmul.mubr.msk.bf16.vlgmr.msra.gmra.mrb[4].mxu0 %vm322_vm2, %v2128_v10  ;;  %v519_v25 = vsel %vm322_vm2, %v514_v24, 0  ;;  %v567_v27 = vsel %vm322_vm2, %v562_v26, 0 }
 0x238   : > { %1509 = vmatpush3.bf16.xpose.msra.mxu0 %v471_v23  ;;  %1510 = vmatprep.mubr.msk.bf16.mxu0 %vm1881_vm0, %v1880_v0 }
 0x239   : > { %1520 = vmatprep.subr.bf16.mxu0 %v1880_v0 }
 0x23a   : > { %v610_v28 = vpop.permute.xlu1 %609  ;;  %v658_v30 = vpop.permute.xlu0 %657 }
 0x23b   : > { %1505 = vmatmul.mubr.msk.bf16.vlgmr.msra.gmra.mrb[4].mxu1 %vm322_vm2, %v2133_v12  ;;  %v615_v29 = vsel %vm322_vm2, %v610_v28, 0  ;;  %v663_v31 = vsel %vm322_vm2, %v658_v30, 0 }
 0x23c   : > { %1515 = vmatpush3.bf16.xpose.msra.mxu1 %v519_v25  ;;  %1516 = vmatprep.mubr.msk.bf16.mxu1 %vm1881_vm0, %v1880_v0 }
 0x23d   : > { %1526 = vmatprep.subr.bf16.mxu1 %v1880_v0 }
 0x23f   : > { %1511 = vmatmul.mubr.msk.bf16.vlgmr.msra.gmra.mrb[8].mxu0 %vm322_vm2, %v2126_v9 }
 0x240   : > { %1521 = vmatpush3.bf16.xpose.msra.mxu0 %v567_v27  ;;  %1522 = vmatprep.mubr.msk.bf16.mxu0 %vm1881_vm0, %v1880_v0 }
 0x241   : > { %1532 = vmatprep.subr.bf16.mxu0 %v1880_v0 }
 0x243   : > { %1517 = vmatmul.mubr.msk.bf16.vlgmr.msra.gmra.mrb[8].mxu1 %vm322_vm2, %v2131_v11 }
 0x244   : > { %1527 = vmatpush3.bf16.xpose.msra.mxu1 %v615_v29  ;;  %1528 = vmatprep.mubr.msk.bf16.mxu1 %vm1881_vm0, %v1880_v0 }
 0x245   : > { %1538 = vmatprep.subr.bf16.mxu1 %v1880_v0 }
 0x247   : > { %1523 = vmatmul.mubr.msk.bf16.vlgmr.msra.gmra.mrb[12].mxu0 %vm322_vm2, %v2139_v14 }
 0x248   : > { %1533 = vmatpush3.bf16.xpose.msra.mxu0 %v663_v31  ;;  %1534 = vmatprep.mubr.msk.bf16.mxu0 %vm1881_vm0, %v1880_v0 }
 0x249   : > { %1544 = vmatprep.subr.bf16.mxu0 %v1880_v0 }
 0x24b   : > { %1529 = vmatmul.mubr.msk.bf16.vlgmr.msra.gmra.mrb[12].mxu1 %vm322_vm2, %v2137_v13 }
 0x24c   : > { %1540 = vmatprep.mubr.msk.bf16.mxu1 %vm1881_vm0, %v1880_v0 }
 0x24f   : > { %1535 = vmatmul.mubr.msk.bf16.vlgmr.msra.gmra.mrb[16].mxu0 %vm322_vm2, %v2143_v16 }
 0x250   : > { %1546 = vmatprep.mubr.msk.bf16.mxu0 %vm1881_vm0, %v1880_v0 }
 0x2a3   : > { %v363_v32 = vpop.f32.mrb[0].mxu1 }
 0x2a4   : > { %v1494_v33 = vpop.f32.mrb[1].mxu1  ;;  %v706_v34 = vsel %vm705_vm3, %v363_v32, -inf }
 0x2a5   : > { %v366_v35 = vpop.f32.mrb[2].mxu1  ;;  %707 = vmax.xlane.f32.xlu1 %v706_v34 }
 0x2a6   : > { %v1495_v36 = vpop.f32.mrb[3].mxu1 }
 0x30a   : > { %v411_v37 = vpop.f32.mrb[4].mxu0 }
 0x30b   : > { %v1500_v38 = vpop.f32.mrb[5].mxu0  ;;  %v709_v39 = vsel %vm705_vm3, %v411_v37, -inf }
 0x30c   : > { %710 = vmax.xlane.f32.xlu0 %v709_v39  ;;  %v414_v40 = vpop.f32.mrb[6].mxu0 }
 0x30d   : > { %v1501_v41 = vpop.f32.mrb[7].mxu0 }
 0x30e   : > { %v459_v42 = vpop.f32.mrb[4].mxu1 }
 0x30f   : > { %v1506_v43 = vpop.f32.mrb[5].mxu1  ;;  %v712_v44 = vsel %vm705_vm3, %v459_v42, -inf }
 0x310   : > { %v462_v45 = vpop.f32.mrb[6].mxu1  ;;  %713 = vmax.xlane.f32.xlu0 %v712_v44 }
 0x311   : > { %v1507_v46 = vpop.f32.mrb[7].mxu1 }
 0x312   : > { %v507_v47 = vpop.f32.mrb[8].mxu0 }
 0x313   : > { %v1512_v48 = vpop.f32.mrb[9].mxu0  ;;  %v715_v49 = vsel %vm705_vm3, %v507_v47, -inf }
 0x314   : > { %716 = vmax.xlane.f32.xlu1 %v715_v49  ;;  %v510_v50 = vpop.f32.mrb[10].mxu0 }
 0x315   : > { %v1513_v51 = vpop.f32.mrb[11].mxu0 }
 0x316   : > { %v2199_v52 = vpop.f32.mrb[8].mxu1 }
 0x317   : > { %v1518_v53 = vpop.f32.mrb[9].mxu1  ;;  %v718_v54 = vsel %vm705_vm3, %v2199_v52, -inf }
 0x318   : > { %v558_v55 = vpop.f32.mrb[10].mxu1  ;;  %719 = vmax.xlane.f32.xlu0 %v718_v54 }
 0x319   : > { %v1519_v56 = vpop.f32.mrb[11].mxu1 }
 0x31a   : > { %v603_v57 = vpop.f32.mrb[12].mxu0 }
 0x31b   : > { %v1524_v58 = vpop.f32.mrb[13].mxu0  ;;  %v721_v59 = vsel %vm705_vm3, %v603_v57, -inf }
 0x31c   : > { %722 = vmax.xlane.f32.xlu1 %v721_v59  ;;  %v606_v60 = vpop.f32.mrb[14].mxu0 }
 0x31d   : > { %v1525_v61 = vpop.f32.mrb[15].mxu0 }
 0x31e   : > { %v2204_v62 = vpop.f32.mrb[12].mxu1 }
 0x31f   : > { %v1530_v63 = vpop.f32.mrb[13].mxu1  ;;  %v724_v1 = vsel %vm705_vm3, %v2204_v62, -inf }
 0x320   : > { %v654_v2 = vpop.f32.mrb[14].mxu1  ;;  %725 = vmax.xlane.f32.xlu0 %v724_v1 }
 0x321   : > { %v1531_v3 = vpop.f32.mrb[15].mxu1 }
 0x322   : > { %v699_v4 = vpop.f32.mrb[16].mxu0 }
 0x323   : > { %v1536_v6 = vpop.f32.mrb[17].mxu0  ;;  %v727_v7 = vsel %vm705_vm3, %v699_v4, -inf }
 0x324   : > { %728 = vmax.xlane.f32.xlu1 %v727_v7  ;;  %v702_v8 = vpop.f32.mrb[18].mxu0 }
 0x325   : > { %v1537_v15 = vpop.f32.mrb[19].mxu0 }
 0x332   : > { %v708_v17 = vpop.xlane.xlu1 %707 }
 0x333   : > { %v730_v18 = vsub.f32 %v363_v32, %v708_v17 }
 0x335   : > { %851 = vrot.lane.b32.xlu1 %v2128_v10, %s1890_s24  ;;  %v738_v19 = vmul.f32 1.442695, %v730_v18 }
 0x336   : > { %802 = vrot.lane.b32.xlu0 %v2116_v5, %s1890_s24 }
 0x337   : > { %1685 = vpow2.f32 %v738_v19 }
 0x339   : > { %899 = vrot.lane.b32.xlu1 %v2133_v12, %s1890_s24 }
 0x33a   : > { %947 = vrot.lane.b32.xlu0 %v2126_v9, %s1890_s24 }
 0x33d   : > { %995 = vrot.lane.b32.xlu1 %v2131_v11, %s1890_s24 }
 0x341   : > { %v2219_v20 = vpop.eup %1685 }
 0x342   : > { %v754_v10 = vsel %vm705_vm3, %v2219_v20, 0.0 }
 0x359   : > { %755 = vadd.xlane.f32.xlu0 %v754_v10 }
 0x399   : > { %v711_v5 = vpop.xlane.xlu0 %710 }
 0x39a   : > { %v731_v21 = vsub.f32 %v411_v37, %v711_v5 }
 0x39c   : > { %v740_v22 = vmul.f32 1.442695, %v731_v21 }
 0x39d   : > { %v714_v12 = vpop.xlane.xlu0 %713 }
 0x39e   : > { %1687 = vpow2.f32 %v740_v22  ;;  %v732_v23 = vsub.f32 %v459_v42, %v714_v12 }
 0x3a0   : > { %v742_v9 = vmul.f32 1.442695, %v732_v23 }
 0x3a1   : > { %v717_v24 = vpop.xlane.xlu1 %716 }
 0x3a2   : > { %1689 = vpow2.f32 %v742_v9  ;;  %v733_v11 = vsub.f32 %v507_v47, %v717_v24 }
 0x3a4   : > { %v744_v25 = vmul.f32 1.442695, %v733_v11 }
 0x3a5   : > { %v720_v27 = vpop.xlane.xlu0 %719 }
 0x3a6   : > { %1691 = vpow2.f32 %v744_v25  ;;  %v734_v48 = vsub.f32 %v2199_v52, %v720_v27 }
 0x3a8   : > { %v2223_v26 = vpop.eup %1687  ;;  %v746_v49 = vmul.f32 1.442695, %v734_v48 }
 0x3a9   : > { %v723_v28 = vpop.xlane.xlu1 %722  ;;  %v757_v29 = vsel %vm705_vm3, %v2223_v26, 0.0 }
 0x3aa   : > { %v735_v30 = vsub.f32 %v603_v57, %v723_v28  ;;  %758 = vadd.xlane.f32.xlu1 %v757_v29 }
 0x3ac   : > { %v2227_v31 = vpop.eup %1689  ;;  %v748_v32 = vmul.f32 1.442695, %v735_v30 }
 0x3ad   : > { %v726_v33 = vpop.xlane.xlu0 %725  ;;  %v760_v34 = vsel %vm705_vm3, %v2227_v31, 0.0 }
 0x3ae   : > { %1693 = vpow2.f32 %v748_v32  ;;  %761 = vadd.xlane.f32.xlu0 %v760_v34  ;;  %v736_v50 = vsub.f32 %v2204_v62, %v726_v33 }
 0x3b0   : > { %v2231_v35 = vpop.eup %1691  ;;  %v750_v51 = vmul.f32 1.442695, %v736_v50 }
 0x3b1   : > { %v803_v36 = vpop.permute.xlu0 %802  ;;  %v729_v37 = vpop.xlane.xlu1 %728  ;;  %v763_v38 = vsel %vm705_vm3, %v2231_v35, 0.0 }
 0x3b2   : > { %v809_v39 = vsel %vm807_vm4, %v803_v36, 0  ;;  %v737_v40 = vsub.f32 %v699_v4, %v729_v37  ;;  %764 = vadd.xlane.f32.xlu1 %v763_v38 }
 0x3b3   : > { %1539 = vmatpush3.bf16.msra.mxu1 %v809_v39 }
 0x3b4   : > { %v752_v41 = vmul.f32 1.442695, %v737_v40  ;;  %1550 = vmatprep.subr.bf16.mxu1 %v1880_v0 }
 0x3b5   : > { %v852_v42 = vpop.permute.xlu1 %851  ;;  %v948_v54 = vpop.permute.xlu0 %947 }
 0x3b6   : > { %1695 = vpow2.f32 %v752_v41  ;;  %v857_v43 = vsel %vm807_vm4, %v852_v42, 0  ;;  %v953_v7 = vsel %vm807_vm4, %v948_v54, 0 }
 0x3b7   : > { %1545 = vmatpush3.bf16.msra.mxu0 %v857_v43  ;;  %1697 = vpow2.f32 %v746_v49 }
 0x3b8   : > { %v2238_v44 = vpop.eup %1693  ;;  %1556 = vmatprep.subr.bf16.mxu0 %v1880_v0  ;;  %1699 = vpow2.f32 %v750_v51 }
 0x3b9   : > { %v769_v45 = vsel %vm705_vm3, %v2238_v44, 0.0  ;;  %v900_v58 = vpop.permute.xlu1 %899 }
 0x3ba   : > { %770 = vadd.xlane.f32.xlu1 %v769_v45  ;;  %v905_v60 = vsel %vm807_vm4, %v900_v58, 0 }
 0x3bd   : > { %v996_v61 = vpop.permute.xlu1 %995 }
 0x3be   : > { %v1001_v18 = vsel %vm807_vm4, %v996_v61, 0 }
 0x3c0   : > { %v2243_v46 = vpop.eup %1695 }
 0x3c1   : > { %v775_v47 = vsel %vm705_vm3, %v2243_v46, 0.0  ;;  %v2253_v53 = vpop.eup %1697 }
 0x3c2   : > { %776 = vadd.xlane.f32.xlu1 %v775_v47  ;;  %v766_v55 = vsel %vm705_vm3, %v2253_v53, 0.0  ;;  %v2257_v56 = vpop.eup %1699 }
 0x3c3   : > { %v772_v52 = vsel %vm705_vm3, %v2257_v56, 0.0 }
 0x3c4   : > { %1043 = vrot.lane.b32.xlu0 %v2139_v14, %s1890_s24 }
 0x3d3   : > { %1091 = vrot.lane.b32.xlu1 %v2137_v13, %s1890_s24 }
 0x3e3   : > { %767 = vadd.xlane.f32.xlu0 %v766_v55 }
 0x3e6   : > { %v756_v14 = vpop.xlane.xlu0 %755 }
 0x3e7   : > { %1701 = vrcp.f32 %v756_v14  ;;  %773 = vadd.xlane.f32.xlu0 %v772_v52 }
 0x3f1   : > { %v1702_v57 = vpop.eup %1701 }
 0x3f2   : > { %v786_v13 = vmul.f32 %v1702_v57, %v2219_v20 }
 0x3f4   : > { %v794_v59 = vpack.c.bf16 %v786_v13, %v786_v13 }
 0x3f6   : > { %1541 = vmatmul.mubr.msk.bf16.vlgmr.msra.gmra.mrb[16].mxu1 %vm705_vm3, %v794_v59  ;;  %v1683_v59 = vld [vmem:[#allocation7] sm:$0xff]  }
 0x3f7   : > { %1551 = vmatpush3.bf16.msra.mxu1 %v905_v60  ;;  %1552 = vmatprep.mubr.msk.bf16.mxu1 %vm1881_vm0, %v1880_v0  ;;  %v1684_v60 = vld [vmem:[#allocation7 + $0x8] sm:$0xff]  }
 0x3f8   : > { %1562 = vmatprep.subr.bf16.mxu1 %v1880_v0 }
 0x3fd   : > { %1139 = vrot.lane.b32.xlu0 %v2143_v16, %s1890_s24  ;;  %s2320_s24 = scalar_lea.hbm %s2369_s4, %s1441_s30 }
 0x437   : > { %v759_v62 = vpop.xlane.xlu1 %758 }
 0x438   : > { %1703 = vrcp.f32 %v759_v62 }
 0x43b   : > { %v762_v63 = vpop.xlane.xlu0 %761 }
 0x43c   : > { %1705 = vrcp.f32 %v762_v63 }
 0x43f   : > { %v765_v1 = vpop.xlane.xlu1 %764  ;;  %v1044_v20 = vpop.permute.xlu0 %1043 }
 0x440   : > { %1707 = vrcp.f32 %v765_v1  ;;  %v1049_v5 = vsel %vm807_vm4, %v1044_v20, 0 }
 0x442   : > { %v1704_v2 = vpop.eup %1703 }
 0x443   : > { %v787_v3 = vmul.f32 %v1704_v2, %v2223_v26 }
 0x445   : > { %v795_v4 = vpack.c.bf16 %v787_v3, %v787_v3 }
 0x446   : > { %v1706_v6 = vpop.eup %1705 }
 0x447   : > { %v788_v8 = vmul.f32 %v1706_v6, %v2227_v31  ;;  %1547 = vmatmul.mubr.msk.bf16.vlgmr.msra.gmra.mrb[20].mxu0 %vm705_vm3, %v795_v4  ;;  %v771_v15 = vpop.xlane.xlu1 %770 }
 0x448   : > { %1557 = vmatpush3.bf16.msra.mxu0 %v953_v7  ;;  %1709 = vrcp.f32 %v771_v15  ;;  %1558 = vmatprep.mubr.msk.bf16.mxu0 %vm1881_vm0, %v1880_v0 }
 0x449   : > { %v796_v16 = vpack.c.bf16 %v788_v8, %v788_v8  ;;  %1568 = vmatprep.subr.bf16.mxu0 %v1880_v0 }
 0x44a   : > { %v1708_v17 = vpop.eup %1707 }
 0x44b   : > { %v789_v19 = vmul.f32 %v1708_v17, %v2231_v35  ;;  %1553 = vmatmul.mubr.msk.bf16.vlgmr.msra.gmra.mrb[20].mxu1 %vm705_vm3, %v796_v16 }
 0x44c   : > { %1563 = vmatpush3.bf16.msra.mxu1 %v1001_v18  ;;  %1564 = vmatprep.mubr.msk.bf16.mxu1 %vm1881_vm0, %v1880_v0 }
 0x44d   : > { %v797_v10 = vpack.c.bf16 %v789_v19, %v789_v19  ;;  %1574 = vmatprep.subr.bf16.mxu1 %v1880_v0 }
 0x44f   : > { %1559 = vmatmul.mubr.msk.bf16.vlgmr.msra.gmra.mrb[24].mxu0 %vm705_vm3, %v797_v10  ;;  %v777_v23 = vpop.xlane.xlu1 %776 }
 0x450   : > { %1569 = vmatpush3.bf16.msra.mxu0 %v1049_v5  ;;  %1570 = vmatprep.mubr.msk.bf16.mxu0 %vm1881_vm0, %v1880_v0  ;;  %1711 = vrcp.f32 %v777_v23 }
 0x451   : > { %1580 = vmatprep.subr.bf16.mxu0 %v1880_v0 }
 0x452   : > { %v1710_v21 = vpop.eup %1709 }
 0x453   : > { %v791_v22 = vmul.f32 %v1710_v21, %v2238_v44  ;;  %v1092_v31 = vpop.permute.xlu1 %1091 }
 0x454   : > { %v1097_v34 = vsel %vm807_vm4, %v1092_v31, 0 }
 0x455   : > { %v799_v12 = vpack.c.bf16 %v791_v22, %v791_v22 }
 0x457   : > { %1571 = vmatmul.mubr.msk.bf16.vlgmr.msra.gmra.mrb[28].mxu0 %vm705_vm3, %v799_v12 }
 0x458   : > { %1582 = vmatprep.mubr.msk.bf16.mxu0 %vm1881_vm0, %v1880_v0 }
 0x45a   : > { %v1712_v24 = vpop.eup %1711 }
 0x45b   : > { %v793_v25 = vmul.f32 %v1712_v24, %v2243_v46 }
 0x45d   : > { %v801_v29 = vpack.c.bf16 %v793_v25, %v793_v25 }
 0x470   : > { %v768_v9 = vpop.xlane.xlu0 %767 }
 0x471   : > { %1713 = vrcp.f32 %v768_v9 }
 0x474   : > { %v774_v11 = vpop.xlane.xlu0 %773 }
 0x475   : > { %1715 = vrcp.f32 %v774_v11 }
 0x478   : > { %v1140_v26 = vpop.permute.xlu0 %1139 }
 0x479   : > { %v1145_v27 = vsel %vm807_vm4, %v1140_v26, 0 }
 0x47a   : > { %1581 = vmatpush3.bf16.msra.mxu0 %v1145_v27 }
 0x47b   : > { %v1714_v28 = vpop.eup %1713 }
 0x47c   : > { %v790_v30 = vmul.f32 %v1714_v28, %v2253_v53 }
 0x47d   : > { %1583 = vmatmul.mubr.msk.bf16.vlgmr.msra.gmra.mrb[32].mxu0 %vm705_vm3, %v801_v29  ;;  %v1436_v29 = vld [vmem:[%s2368_s3] ss:$0 sm:$0xff] }
 0x47e   : > { %v798_v32 = vpack.c.bf16 %v790_v30, %v790_v30 }
 0x47f   : > { %v1716_v33 = vpop.eup %1715 }
 0x480   : > { %1565 = vmatmul.mubr.msk.bf16.vlgmr.msra.gmra.mrb[24].mxu1 %vm705_vm3, %v798_v32  ;;  %v792_v35 = vmul.f32 %v1716_v33, %v2257_v56 }
 0x481   : > { %1575 = vmatpush3.bf16.msra.mxu1 %v1097_v34  ;;  %1576 = vmatprep.mubr.msk.bf16.mxu1 %vm1881_vm0, %v1880_v0 }
 0x482   : > { %1586 = vmatprep.subr.bf16.mxu1 %v1880_v0  ;;  %v800_v36 = vpack.c.bf16 %v792_v35, %v792_v35 }
 0x488   : > { %1577 = vmatmul.mubr.msk.bf16.vlgmr.msra.gmra.mrb[28].mxu1 %vm705_vm3, %v800_v36 }
 0x489   : > { %1590 = vmatprep.mubr.msk.bf16.mxu1 %vm1881_vm0, %v1880_v0  ;;  %1587 = vmatpush3.bf16.msra.mxu1 %v1683_v59 }
 0x48a   : > { %1588 = vmatprep.subr.bf16.mxu1 %v1880_v0 }
 0x48d   : > { %1589 = vmatpush3.bf16.msra.mxu1 %v1684_v60 }
 0x4c9   : > { %v2304_v37 = vpop.f32.mrb[16].mxu1 }
 0x4ca   : > { %v1542_v38 = vpop.f32.mrb[17].mxu1  ;;  %v1187_v10 = vpack.c.bf16 %v2304_v37, %v2304_v37 }
 0x4cb   : > { %v848_v39 = vpop.f32.mrb[18].mxu1 }
 0x4cc   : > { %v1543_v40 = vpop.f32.mrb[19].mxu1 }
 0x51a   : > { %v893_v41 = vpop.f32.mrb[20].mxu0 }
 0x51b   : > { %v1188_v42 = vpack.c.bf16 %v893_v41, %v893_v41  ;;  %v1548_v43 = vpop.f32.mrb[21].mxu0 }
 0x51c   : > { %v896_v44 = vpop.f32.mrb[22].mxu0 }
 0x51d   : > { %1196 = vrot.lane.b32.xlu1 %v1188_v42, %s1891_s20  ;;  %v1549_v45 = vpop.f32.mrb[23].mxu0  ;;  %s1803_s20 = scalar_lea.vmem %s2322_s6, 128 }
 0x51e   : > { %v941_v46 = vpop.f32.mrb[20].mxu1  ;;  %p1804_p8 = scmp.ne.s32.totalorder %s2322_s6, %s1803_s20 }
 0x51f   : > { %v1189_v47 = vpack.c.bf16 %v941_v46, %v941_v46  ;;  %v1554_v48 = vpop.f32.mrb[21].mxu1 }
 0x520   : > { %v944_v49 = vpop.f32.mrb[22].mxu1  ;;  %p1805_p1 = pnand %p1804_p8, %p2383_p0 }
 0x521   : > { %1199 = vrot.lane.b32.xlu0 %v1189_v47, %s1892_s28  ;;  %v1555_v50 = vpop.f32.mrb[23].mxu1  ;;  %s1898_s28 = smov [#allocation8]  }
 0x522   : > { %v989_v51 = vpop.f32.mrb[24].mxu0  ;;  %p1806_p3 = pneg %p1805_p1 }
 0x523   : > { %v1190_v53 = vpack.c.bf16 %v989_v51, %v989_v51  ;;  %v1560_v54 = vpop.f32.mrb[25].mxu0 }
 0x524   : > { %v992_v55 = vpop.f32.mrb[26].mxu0 }
 0x525   : > { %1202 = vrot.lane.b32.xlu1 %v1190_v53, %s1893_s11  ;;  %v1561_v56 = vpop.f32.mrb[27].mxu0  ;;  %s1807_s11 = sshll.u32 %s1898_s28, 4  ;;  %s1808_s11 = int_to_ptr.vmem [resolvable:$false] %s1807_s11 }
 0x526   : > { %p1810_p7 = scmp.lt.s32.totalorder %s2322_s6, %s1808_s11 }
 0x52a   : > { %v1085_v14 = vpop.f32.mrb[28].mxu0 }
 0x52b   : > { %v1192_v52 = vpack.c.bf16 %v1085_v14, %v1085_v14  ;;  %v1572_v57 = vpop.f32.mrb[29].mxu0 }
 0x52c   : > { %v1088_v13 = vpop.f32.mrb[30].mxu0 }
 0x52d   : > { %1208 = vrot.lane.b32.xlu1 %v1192_v52, %s1894_s12  ;;  %v1573_v58 = vpop.f32.mrb[31].mxu0  ;;  %s1809_s12 = scalar_lea.vmem %s1808_s11, 256 }
 0x52e   : > { %p1811_p9 = scmp.lt.s32.totalorder %s1809_s12, %s1803_s20 }
 0x530   : > { %p1812_p12 = por %p1811_p9, %p1810_p7 }
 0x532   : > { %p1813_p2 = pnand %p1812_p12, %p1806_p3 }
 0x550   : > { %v1181_v61 = vpop.f32.mrb[32].mxu0 }
 0x551   : > { %v1194_v62 = vpack.c.bf16 %v1181_v61, %v1181_v61  ;;  %v1584_v63 = vpop.f32.mrb[33].mxu0 }
 0x552   : > { %v1184_v1 = vpop.f32.mrb[34].mxu0 }
 0x553   : > { %v1037_v2 = vpop.f32.mrb[24].mxu1  ;;  %1214 = vrot.lane.b32.xlu1 %v1194_v62, %s1895_s25  ;;  %v1585_v3 = vpop.f32.mrb[35].mxu0 }
 0x554   : > { %v1191_v4 = vpack.c.bf16 %v1037_v2, %v1037_v2  ;;  %v1566_v6 = vpop.f32.mrb[25].mxu1 }
 0x555   : > { %v1040_v7 = vpop.f32.mrb[26].mxu1 }
 0x556   : > { %1205 = vrot.lane.b32.xlu0 %v1191_v4, %s1896_s7  ;;  %v1567_v8 = vpop.f32.mrb[27].mxu1 }
 0x55b   : > { %v1133_v15 = vpop.f32.mrb[28].mxu1 }
 0x55c   : > { %v1193_v16 = vpack.c.bf16 %v1133_v15, %v1133_v15  ;;  %v1578_v17 = vpop.f32.mrb[29].mxu1 }
 0x55d   : > { %v1136_v18 = vpop.f32.mrb[30].mxu1 }
 0x55e   : > { %1211 = vrot.lane.b32.xlu0 %v1193_v16, %s1897_s8  ;;  %v1579_v0 = vpop.f32.mrb[31].mxu1 }
 0x58f   : > { %v1197_v19 = vpop.permute.xlu1 %1196 }
 0x590   : > { %v1218_v21 = vsel %vm322_vm2, %v1187_v10, %v1197_v19 }
 0x593   : > { %v1200_v20 = vpop.permute.xlu0 %1199 }
 0x594   : > { %v1220_v12 = vsel %vm705_vm3, %v1218_v21, %v1200_v20 }
 0x597   : > { %v1203_v5 = vpop.permute.xlu1 %1202 }
 0x598   : > { %v1223_v23 = vsel %vm1221_vm5, %v1220_v12, %v1203_v5 }
 0x59f   : > { %v1209_v9 = vpop.permute.xlu1 %1208 }
 0x5c5   : > { %v1215_v26 = vpop.permute.xlu1 %1214 }
 0x5c8   : > { %v1206_v22 = vpop.permute.xlu0 %1205 }
 0x5c9   : > { %v1226_v24 = vsel %vm1224_vm6, %v1223_v23, %v1206_v22 }
 0x5ca   : > { %v1229_v25 = vsel %vm1227_vm7, %v1226_v24, %v1209_v9 }
 0x5d0   : > { %v1212_v11 = vpop.permute.xlu0 %1211 }
 0x5d1   : > { %v1232_v27 = vsel %vm1230_vm8, %v1229_v25, %v1212_v11 }
 0x5d2   : > { %v1235_v28 = vsel %vm1233_vm9, %v1232_v27, %v1215_v26 }
 0x5d3   : > { %1591 = vmatmul.mubr.msk.bf16.vlgmr.msra.gmra.mrb[32].mxu1 %vm260_vm1, %v1235_v28 }
 0x6a6   : > { %v1295_v30 = vpop.f32.mrb[32].mxu1 }
 0x6a7   : > { %v1296_v31 = vadd.f32 %v1436_v29, %v1295_v30  ;;  %v1592_v32 = vpop.f32.mrb[33].mxu1 }
 0x6a8   : > { %v1298_v33 = vpop.f32.mrb[34].mxu1 }
 0x6a9   : > { %v1593_v34 = vpop.f32.mrb[35].mxu1  ;;  %1301 = vst.msk [vmem:[%s241_s5] sm:$0xff] %vm260_vm1, %v1296_v31 }
 0x6aa   : > { %1816 = shalt.err (!%p1813_p2)
}
 0x6ab   : > { %s1817_s29 = scalar_lea.hbm %s2320_s24, 128  ;;  %s1821_s8 = scalar_lea.hbm %s2369_s4, 256 }
 0x6ac   : > { %p1818_p13 = scmp.ne.s32.totalorder %s2320_s24, %s1817_s29  ;;  %p1822_p4 = scmp.lt.u32.totalorder %s2320_s24, %s2369_s4 }
 0x6ad   : > { %p1823_p5 = scmp.lt.u32.totalorder %s1821_s8, %s1817_s29  ;;  %p1825_p8 = scmp.lt.u32.totalorder %s1817_s29, %s2320_s24 }
 0x6ae   : > { %p1819_p6 = pnand %p1818_p13, %p2383_p0 }
 0x6af   : > { %p1824_p11 = por %p1823_p5, %p1822_p4 }
 0x6b0   : > { %p1820_p10 = pneg %p1819_p6 }
 0x6b1   : > { %p1826_p1 = por %p1825_p8, %p1824_p11 }
 0x6b3   : > { %p1827_p3 = pnand %p1826_p1, %p1820_p10 }
 0x6b5   : > { %1830 = shalt.err (!%p1827_p3)
}
 0x6b6   : > { %1604 = dma.vmem_to_hbm [thread:$0]  (%p2383_p0), %s2322_s6, 128, %s2320_s24, %s1303_s19  }
 0x6b7 PF: > { %s1328_s27 = sand.u32 1, %s1861_s15   ;;  %p2384_p7 = scmp.ne.s32.totalorder %s2374_s22, 0 }
 0x6b8   : > { %p2385_p9 = scmp.ge.s32.totalorder %s1873_s18, 2  ;;  %s1329_s30 = scalar_lea.sflag [#allocation4], %s1328_s27 }
 0x6ba   : > { %p1618_p12 = pnand %p2385_p9, %p2384_p7 }
 0x6bc   : > { %1856 = dma.done.wait (!%p1618_p12), %s1329_s30, 128  }
 0x6bd   : > { %1858 = vsyncadd (!%p1618_p12), %s1329_s30, 4294967168  ;;  %p18_p2 = scmp.ge.s32.totalorder %s2034_s9, 4   ;;  %s2386_s15 = smov %s1865_s16 }
 0x6be   : > { %s2387_s16 = smov %s1869_s17  ;;  %s2388_s17 = smov %s2050_s14 }
 0x6bf   : > { %s2389_s18 = smov %s2034_s9  ;;  %20 = sbr.rel (!%p18_p2) target bundleno = 6 (0x6), region = 89 }
 0x6c6   :  { %1334 = vsyncpa [#allocation3], 1 }
 0x6c7   :  { %1336 = vsyncpa [#allocation3 + $0x1], 1 }
 0x6c8   :  { %1337 = vsyncpa [#allocation6], 1 }
 0x6c9   :  { %1338 = vsyncpa [#allocation4], 1 }
 0x6ca   :  { %1340 = vsyncpa [#allocation4 + $0x1], 1 }

// kernel: tpu_custom_call.1
= control target key start
LH: loop header
LB: loop body
LE: loop exit
PB: predicated region body
PF: predicated region fallthrough
CT: control target
= control target key end

     0   :  { %9 = vsyncpa [#allocation3], 0  ;;  %s2365_s0 = inlined_call_operand.hbm [shape: bf16[2,8,32], index: 0, kind: input, shape index: {}]   ;;  %s2366_s1 = inlined_call_operand.hbm [shape: bf16[32,96], index: 1, kind: input, shape index: {}]   ;;  %s2367_s2 = inlined_call_operand.hbm [shape: bf16[32,32], index: 2, kind: input, shape index: {}]   ;;  %s2368_s3 = inlined_call_operand.vmem [shape: f32[1,32], index: 3, kind: input, shape index: {}]   ;;  %s2369_s4 = inlined_call_operand.hbm [shape: f32[2,8,32], index: 4, kind: output, shape index: {}]  }
   0x1   :  { %11 = vsyncpa [#allocation3 + $0x1], 0 }
   0x2   :  { %12 = vsyncpa [#allocation6], 0 }
   0x3   :  { %13 = vsyncpa [#allocation4], 0 }
   0x4   :  { %15 = vsyncpa [#allocation4 + $0x1], 0  ;;  %s1924_s15 = smov 0   ;;  %s1926_s16 = smov 0  }
   0x5   :  { %s1928_s17 = smov 0   ;;  %s1930_s18 = smov 0  }
   0x6 LB: > { %s1945_s19 = sadd.s32 4294967295, %s1873_s18   ;;  %s1405_s20 = sadd.s32 4294967294, %s1873_s18   ;;  %s1873_s18 = sphi %s1930_s18, %s2389_s18   ;;  %s1869_s17 = sphi %s1928_s17, %s2388_s17   ;;  %s1865_s16 = sphi %s1926_s16, %s2387_s16   ;;  %s1861_s15 = sphi %s1924_s15, %s2386_s15  }
   0x7   : > { %p41_p0 = scmp.ne.s32.totalorder %s1865_s16, %s1861_s15  ;;  %p2370_p1 = scmp.eq.s32.totalorder %s1945_s19, 0 }
   0x8   : > { %p134_p3 = scmp.eq.s32.totalorder %s1405_s20, 1  ;;  %p1406_p5 = scmp.ge.s32.totalorder %s1873_s18, 1 }
   0x9   : > { %p1954_p4 = por %p2370_p1, %p41_p0  ;;  %p141_p7 = scmp.lt.s32.totalorder %s1873_s18, 3 }
   0xa   : > { %p1959_p6 = por %p134_p3, %p41_p0  ;;  %s1875_s24 = smov [#allocation5]  }
   0xb   : > { %s2373_s21 = scalar_select %p1954_p4, 1, 0 }
   0xc   : > { %s2374_s22 = scalar_select %p1959_p6, 1, 0 }
   0xd   : > { %p1964_p8 = pnand %p1406_p5, %p141_p7  ;;  %s153_s25 = sshll.u32 %s1875_s24, 4  ;;  %s1968_s25 = int_to_ptr.vmem [resolvable:$true] %s153_s25 }
   0xe   : > { %s1876_s27 = smov [#allocation7]   ;;  %s1717_s5 = scalar_lea.hbm %s2366_s1, 256 }
   0xf   : > { %p1606_p9 = pneg %p1964_p8  ;;  %s166_s28 = sshll.u32 %s1876_s27, 4  ;;  %s1979_s28 = int_to_ptr.vmem [resolvable:$true] %s166_s28 }
  0x10   : > { %p1718_p12 = scmp.ne.s32.totalorder %s2366_s1, %s1717_s5  ;;  %p1724_p5 = scmp.lt.u32.totalorder %s1717_s5, %s2366_s1 }
  0x11   : > { %p1975_p11 = pnand %p1606_p9, %p2370_p1 }
  0x13   : > { %p1719_p13 = pneg %p1975_p11 }
  0x15   : > { %p1720_p0 = pnand %p1719_p13, %p1718_p12 }
  0x17   : > { %p1721_p3 = pneg %p1720_p0 }
  0x19   : > { %p1726_p7 = pnand %p1724_p5, %p1721_p3 }
  0x1b   : > { %1729 = shalt.err (!%p1726_p7)
}
  0x1c   : > { %s1730_s10 = scalar_lea.vmem %s1968_s25, 256  ;;  %p1738_p2 = scmp.lt.s32.totalorder %s1968_s25, %s1968_s25 }
  0x1d   : > { %p1731_p9 = scmp.ne.s32.totalorder %s1968_s25, %s1730_s10  ;;  %p1739_p12 = scmp.lt.s32.totalorder %s1730_s10, %s1730_s10 }
  0x1f   : > { %p1733_p10 = pnand %p1731_p9, %p1719_p13  ;;  %p1740_p0 = por %p1739_p12, %p1738_p2 }
  0x21   : > { %p1734_p1 = pneg %p1733_p10 }
  0x23   : > { %p1741_p6 = pnand %p1740_p0, %p1734_p1 }
  0x25   : > { %1744 = shalt.err (!%p1741_p6)
}
  0x26   : > { %s1877_s11 = smov 64   ;;  %s1878_s12 = smov 4  }
  0x27   : > { %1609 = dma.hbm_to_vmem [thread:$0]  (!%p1975_p11), %s2366_s1, 256, %s1968_s25, [#allocation6], %s1877_s11, %s1877_s11, %s1878_s12  }
  0x28   : > { %s1745_s27 = scalar_lea.hbm %s2367_s2, 256 }
  0x29   : > { %p1746_p2 = scmp.ne.s32.totalorder %s2367_s2, %s1745_s27  ;;  %p1752_p10 = scmp.lt.u32.totalorder %s1745_s27, %s2367_s2 }
  0x2b   : > { %p1748_p1 = pnand %p1746_p2, %p1719_p13 }
  0x2d   : > { %p1749_p6 = pneg %p1748_p1 }
  0x2f   : > { %p1754_p3 = pnand %p1752_p10, %p1749_p6 }
  0x31   : > { %1757 = shalt.err (!%p1754_p3)
}
  0x32   : > { %s1758_s25 = scalar_lea.vmem %s1979_s28, 256  ;;  %p1766_p12 = scmp.lt.s32.totalorder %s1979_s28, %s1979_s28 }
  0x33   : > { %p1759_p5 = scmp.ne.s32.totalorder %s1979_s28, %s1758_s25  ;;  %p1767_p0 = scmp.lt.s32.totalorder %s1758_s25, %s1758_s25 }
  0x35   : > { %p1761_p7 = pnand %p1759_p5, %p1719_p13  ;;  %p1768_p2 = por %p1767_p0, %p1766_p12 }
  0x37   : > { %p1762_p9 = pneg %p1761_p7 }
  0x39   : > { %p1769_p1 = pnand %p1768_p2, %p1762_p9 }
  0x3b   : > { %1772 = shalt.err (!%p1769_p1)
}
  0x3c   : > { %1612 = dma.hbm_to_vmem [thread:$0]  (!%p1975_p11), %s2367_s2, 256, %s1979_s28, [#allocation6], %s1877_s11, %s1877_s11, %s1878_s12  }
  0x3d   : > { %s2034_s9 = sadd.s32 1, %s1873_s18   ;;  %s28_s26 = sadd.s32 1, %s1869_s17 }
  0x3e   : > { %s25_s10 = ssub.s32 %s1873_s18, %s2034_s9  ;;  %p35_p13 = scmp.ne.s32.totalorder %s1869_s17, %s1865_s16 }
  0x3f   : > { %p26_p6 = scmp.eq.s32.totalorder %s25_s10, 0  ;;  %p36_p10 = scmp.eq.s32.totalorder %s1873_s18, 0 }
  0x40   : > { %p2377_p3 = scmp.eq.s32.totalorder %s1945_s19, 1  ;;  %p1623_p7 = scmp.lt.s32.totalorder %s1873_s18, 2 }
  0x41   : > { %s2050_s14 = scalar_select %p26_p6, %s1869_s17, %s28_s26  }
  0x42   : > { %p2044_p5 = por %p2377_p3, %p35_p13  ;;  %p37_p9 = por %p36_p10, %p35_p13 }
  0x43   : > { %s183_s20 = sand.u32 1, %s1869_s17   ;;  %s1411_s28 = sshll.u32 %s1873_s18, 6 }
  0x44   : > { %s2378_s13 = scalar_select %p2044_p5, 1, 0 }
  0x45   : > { %s1410_s24 = sshll.u32 %s183_s20, 2  ;;  %s2057_s27 = scalar_lea.hbm %s2365_s0, %s1411_s28 }
  0x46   : > { %s187_s29 = scalar_lea.vmem [#allocation2], %s1410_s24  ;;  %p2061_p11 = pnand %p1623_p7, %p37_p9 }
  0x47   : > { %s194_s30 = sshll.u32 %s187_s29, 4  ;;  %s184_s6 = scalar_lea.sflag [#allocation3], %s183_s20  ;;  %s2059_s30 = int_to_ptr.vmem [resolvable:$true] %s194_s30 }
  0x48   : > { %s1773_s25 = scalar_lea.hbm %s2057_s27, 64  ;;  %p1775_p0 = pneg %p2061_p11 }
  0x49   : > { %p1774_p12 = scmp.ne.s32.totalorder %s2057_s27, %s1773_s25  ;;  %s1778_s26 = scalar_lea.hbm %s2365_s0, 128 }
  0x4a   : > { %p1779_p13 = scmp.lt.u32.totalorder %s2057_s27, %s2365_s0  ;;  %p1780_p6 = scmp.lt.u32.totalorder %s1778_s26, %s1773_s25 }
  0x4b   : > { %p1776_p2 = pnand %p1775_p0, %p1774_p12  ;;  %p1782_p3 = scmp.lt.u32.totalorder %s1773_s25, %s2057_s27 }
  0x4c   : > { %p1781_p10 = por %p1780_p6, %p1779_p13 }
  0x4d   : > { %p1777_p1 = pneg %p1776_p2 }
  0x4e   : > { %p1783_p7 = por %p1782_p3, %p1781_p10 }
  0x50   : > { %p1784_p9 = pnand %p1783_p7, %p1777_p1 }
  0x52   : > { %1787 = shalt.err (!%p1784_p9)
}
  0x53   : > { %s1788_s20 = scalar_lea.vmem %s2059_s30, 64  ;;  %s1879_s28 = smov [#allocation2]  }
  0x54   : > { %p1789_p12 = scmp.ne.s32.totalorder %s2059_s30, %s1788_s20  ;;  %s1793_s11 = sshll.u32 %s1879_s28, 4  ;;  %s1794_s11 = int_to_ptr.vmem [resolvable:$false] %s1793_s11 }
  0x55   : > { %s1795_s12 = scalar_lea.vmem %s1794_s11, 128  ;;  %p1796_p4 = scmp.lt.s32.totalorder %s2059_s30, %s1794_s11 }
  0x56   : > { %p1791_p2 = pnand %p1789_p12, %p1775_p0  ;;  %p1797_p13 = scmp.lt.s32.totalorder %s1795_s12, %s1788_s20 }
  0x58   : > { %p1792_p5 = pneg %p1791_p2  ;;  %p1798_p6 = por %p1797_p13, %p1796_p4 }
  0x5a   : > { %p1799_p10 = pnand %p1798_p6, %p1792_p5 }
  0x5c   : > { %1802 = shalt.err (!%p1799_p10)
}
  0x5d   : > { %1616 = dma.hbm_to_vmem [thread:$0]  (!%p2061_p11), %s2057_s27, 64, %s2059_s30, %s184_s6  }
  0x5e   : > { %203 = sbr.rel (%p1964_p8) target bundleno = 1719 (0x6b7), region = 36  ;;  %s2093_s29 = sand.u32 (!%p1964_p8), 1, %s1865_s16  }
  0x5f   : > { %s1413_s25 = sshll.u32 (!%p1964_p8), %s2093_s29, 2  ;;  %s206_s7 = scalar_lea.sflag (!%p1964_p8), [#allocation3], %s2093_s29 }
  0x60   : > { %s209_s8 = scalar_lea.vmem (!%p1964_p8), [#allocation2], %s1413_s25  ;;  %p2380_p4 = scmp.ne.s32.totalorder (!%p1964_p8), %s2373_s21, 0 }
  0x65   : > { %1848 = dma.done.wait (%p2380_p4), %s206_s7, 64  }
  0x66   : > { %1850 = vsyncadd (%p2380_p4), %s206_s7, 4294967232  ;;  %p2381_p5 = scmp.eq.s32.totalorder %s1945_s19, 0 }
  0x68   : > { %1852 = dma.done.wait (%p2381_p5), [#allocation6], 512   ;;  %p2382_p11 = pmov %p2381_p5 }
  0x69   : > { %v1880_v0 = vmov 0.0   ;;  %vm1881_vm0 = vmmov 0   ;;  %v1681_v1 = vld [vmem:[#allocation5] sm:$0xff]   ;;  %v1682_v2 = vld [vmem:[#allocation5 + $0x8] sm:$0xff]   ;;  %v243_v3 = vld [vmem:[%s209_s8] sm:$0xf] }
  0x6a   : > { %1854 = vsyncadd (%p2382_p11), [#allocation6], 4294966784  ;;  %1482 = vmatprep.subr.bf16.mxu0 %v1880_v0  ;;  %1486 = vmatprep.mubr.msk.bf16.mxu0 %vm1881_vm0, %v1880_v0  ;;  %vm260_vm1 = vcmask 261120   ;;  %s1882_s21 = smov 116   ;;  %s1883_s23 = smov 124   ;;  %vm322_vm2 = vcmask 31744  }
  0x6b   : > { %1490 = vmatprep.subr.bf16.mxu1 %v1880_v0  ;;  %1492 = vmatprep.mubr.msk.bf16.mxu1 %vm1881_vm0, %v1880_v0  ;;  %s1884_s27 = smov 112   ;;  %s1885_s30 = smov 120   ;;  %vm705_vm3 = vcmask 64512   ;;  %vm807_vm4 = vcmask 1043456   ;;  %vm1221_vm5 = vcmask 97280   ;;  %vm1224_vm6 = vcmask 130048  }
  0x6c   : > { %1483 = vmatpush3.bf16.msra.mxu0 %v1681_v1  ;;  %s1886_s5 = smov 104   ;;  %s1887_s6 = smov 108   ;;  %vm1227_vm7 = vcmask 162816   ;;  %vm1230_vm8 = vcmask 195584   ;;  %vm1233_vm9 = vcmask 228352  }
  0x6d   : > { %1484 = vmatprep.subr.bf16.mxu0 %v1880_v0  ;;  %s1888_s26 = smov 96   ;;  %s1889_s10 = smov 100  }
  0x6e   : > { %s1890_s24 = smov 64   ;;  %s1891_s20 = smov 4  }
  0x6f   : > { %s1892_s28 = smov 8   ;;  %s1893_s11 = smov 12  }
  0x70   : > { %1485 = vmatpush3.bf16.msra.mxu0 %v1682_v2  ;;  %s1894_s12 = smov 20   ;;  %s1895_s25 = smov 28  }
  0x71   : > { %1496 = vmatprep.subr.bf16.mxu0 %v1880_v0  ;;  %s1896_s7 = smov 16   ;;  %s1897_s8 = smov 24  }
  0x72   : > { %p2383_p0 = scmp.ne.s32.totalorder %s2378_s13, 0 }
  0x73   : > { %1487 = vmatmul.mubr.msk.bf16.vlgmr.msra.gmra.mrb[0].mxu0 %vm260_vm1, %v243_v3 }
  0x74   : > { %1498 = vmatprep.mubr.msk.bf16.mxu0 %vm1881_vm0, %v1880_v0 }
 0x146   : > { %v298_v4 = vpop.f32.mrb[0].mxu0 }
 0x147   : > { %v2116_v5 = vpack.c.bf16 %v298_v4, %v298_v4  ;;  %v1488_v6 = vpop.f32.mrb[1].mxu0 }
 0x148   : > { %v301_v7 = vpop.f32.mrb[2].mxu0 }
 0x149   : > { %310 = vrot.lane.b32.xlu1 %v2116_v5, %s1882_s21  ;;  %306 = vrot.lane.b32.xlu0 %v2116_v5, %s1883_s23  ;;  %v1489_v8 = vpop.f32.mrb[3].mxu0  ;;  %s1416_s21 = sshll.u32 %s2093_s29, 3 }
 0x14d   : > { %312 = vrot.lane.b32.xlu1 %v2116_v5, %s1884_s27  ;;  %308 = vrot.lane.b32.xlu0 %v2116_v5, %s1885_s30  ;;  %s1441_s30 = sshll.u32 %s1945_s19, 7  ;;  %s1303_s19 = scalar_lea.sflag [#allocation4], %s2093_s29 }
 0x151   : > { %316 = vrot.lane.b32.xlu1 %v2116_v5, %s1886_s5  ;;  %314 = vrot.lane.b32.xlu0 %v2116_v5, %s1887_s6  ;;  %s241_s5 = scalar_lea.vmem [#allocation8], %s1416_s21 }
 0x152   : > { %s1316_s6 = sshll.u32 %s241_s5, 4  ;;  %s2322_s6 = int_to_ptr.vmem [resolvable:$true] %s1316_s6 }
 0x155   : > { %320 = vrot.lane.b32.xlu1 %v2116_v5, %s1888_s26  ;;  %318 = vrot.lane.b32.xlu0 %v2116_v5, %s1889_s10 }
 0x1bb   : > { %v2126_v9 = vpop.permute.xlu1 %310  ;;  %v2128_v10 = vpop.permute.xlu0 %306 }
 0x1bc   : > { %369 = vrot.lane.b32.xlu0 %v2128_v10, %s1888_s26 }
 0x1bf   : > { %v2131_v11 = vpop.permute.xlu1 %312  ;;  %v2133_v12 = vpop.permute.xlu0 %308 }
 0x1c0   : > { %465 = vrot.lane.b32.xlu0 %v2126_v9, %s1888_s26  ;;  %417 = vrot.lane.b32.xlu1 %v2133_v12, %s1888_s26 }
 0x1c3   : > { %v2137_v13 = vpop.permute.xlu1 %316  ;;  %v2139_v14 = vpop.permute.xlu0 %314 }
 0x1c4   : > { %513 = vrot.lane.b32.xlu1 %v2131_v11, %s1888_s26  ;;  %561 = vrot.lane.b32.xlu0 %v2139_v14, %s1888_s26 }
 0x1c7   : > { %v321_v15 = vpop.permute.xlu1 %320  ;;  %v2143_v16 = vpop.permute.xlu0 %318 }
 0x1c8   : > { %609 = vrot.lane.b32.xlu1 %v2137_v13, %s1888_s26  ;;  %657 = vrot.lane.b32.xlu0 %v2143_v16, %s1888_s26  ;;  %v327_v17 = vsel %vm322_vm2, %v321_v15, 0 }
 0x1c9   : > { %1491 = vmatpush3.bf16.xpose.msra.mxu1 %v327_v17 }
 0x1ca   : > { %1502 = vmatprep.subr.bf16.mxu1 %v1880_v0 }
 0x1d0   : > { %1493 = vmatmul.mubr.msk.bf16.vlgmr.msra.gmra.mrb[0].mxu1 %vm322_vm2, %v2116_v5 }
 0x1d1   : > { %1504 = vmatprep.mubr.msk.bf16.mxu1 %vm1881_vm0, %v1880_v0 }
 0x22e   : > { %v370_v18 = vpop.permute.xlu0 %369 }
 0x22f   : > { %v375_v19 = vsel %vm322_vm2, %v370_v18, 0 }
 0x230   : > { %1497 = vmatpush3.bf16.xpose.msra.mxu0 %v375_v19 }
 0x231   : > { %1508 = vmatprep.subr.bf16.mxu0 %v1880_v0 }
 0x232   : > { %v418_v20 = vpop.permute.xlu1 %417  ;;  %v466_v22 = vpop.permute.xlu0 %465 }
 0x233   : > { %v423_v21 = vsel %vm322_vm2, %v418_v20, 0  ;;  %v471_v23 = vsel %vm322_vm2, %v466_v22, 0 }
 0x234   : > { %1503 = vmatpush3.bf16.xpose.msra.mxu1 %v423_v21 }
 0x235   : > { %1514 = vmatprep.subr.bf16.mxu1 %v1880_v0 }
 0x236   : > { %v514_v24 = vpop.permute.xlu1 %513  ;;  %v562_v26 = vpop.permute.xlu0 %561 }
 0x237   : > { %1499 = vmatmul.mubr.msk.bf16.vlgmr.msra.gmra.mrb[4].mxu0 %vm322_vm2, %v2128_v10  ;;  %v519_v25 = vsel %vm322_vm2, %v514_v24, 0  ;;  %v567_v27 = vsel %vm322_vm2, %v562_v26, 0 }
 0x238   : > { %1509 = vmatpush3.bf16.xpose.msra.mxu0 %v471_v23  ;;  %1510 = vmatprep.mubr.msk.bf16.mxu0 %vm1881_vm0, %v1880_v0 }
 0x239   : > { %1520 = vmatprep.subr.bf16.mxu0 %v1880_v0 }
 0x23a   : > { %v610_v28 = vpop.permute.xlu1 %609  ;;  %v658_v30 = vpop.permute.xlu0 %657 }
 0x23b   : > { %1505 = vmatmul.mubr.msk.bf16.vlgmr.msra.gmra.mrb[4].mxu1 %vm322_vm2, %v2133_v12  ;;  %v615_v29 = vsel %vm322_vm2, %v610_v28, 0  ;;  %v663_v31 = vsel %vm322_vm2, %v658_v30, 0 }
 0x23c   : > { %1515 = vmatpush3.bf16.xpose.msra.mxu1 %v519_v25  ;;  %1516 = vmatprep.mubr.msk.bf16.mxu1 %vm1881_vm0, %v1880_v0 }
 0x23d   : > { %1526 = vmatprep.subr.bf16.mxu1 %v1880_v0 }
 0x23f   : > { %1511 = vmatmul.mubr.msk.bf16.vlgmr.msra.gmra.mrb[8].mxu0 %vm322_vm2, %v2126_v9 }
 0x240   : > { %1521 = vmatpush3.bf16.xpose.msra.mxu0 %v567_v27  ;;  %1522 = vmatprep.mubr.msk.bf16.mxu0 %vm1881_vm0, %v1880_v0 }
 0x241   : > { %1532 = vmatprep.subr.bf16.mxu0 %v1880_v0 }
 0x243   : > { %1517 = vmatmul.mubr.msk.bf16.vlgmr.msra.gmra.mrb[8].mxu1 %vm322_vm2, %v2131_v11 }
 0x244   : > { %1527 = vmatpush3.bf16.xpose.msra.mxu1 %v615_v29  ;;  %1528 = vmatprep.mubr.msk.bf16.mxu1 %vm1881_vm0, %v1880_v0 }
 0x245   : > { %1538 = vmatprep.subr.bf16.mxu1 %v1880_v0 }
 0x247   : > { %1523 = vmatmul.mubr.msk.bf16.vlgmr.msra.gmra.mrb[12].mxu0 %vm322_vm2, %v2139_v14 }
 0x248   : > { %1533 = vmatpush3.bf16.xpose.msra.mxu0 %v663_v31  ;;  %1534 = vmatprep.mubr.msk.bf16.mxu0 %vm1881_vm0, %v1880_v0 }
 0x249   : > { %1544 = vmatprep.subr.bf16.mxu0 %v1880_v0 }
 0x24b   : > { %1529 = vmatmul.mubr.msk.bf16.vlgmr.msra.gmra.mrb[12].mxu1 %vm322_vm2, %v2137_v13 }
 0x24c   : > { %1540 = vmatprep.mubr.msk.bf16.mxu1 %vm1881_vm0, %v1880_v0 }
 0x24f   : > { %1535 = vmatmul.mubr.msk.bf16.vlgmr.msra.gmra.mrb[16].mxu0 %vm322_vm2, %v2143_v16 }
 0x250   : > { %1546 = vmatprep.mubr.msk.bf16.mxu0 %vm1881_vm0, %v1880_v0 }
 0x2a3   : > { %v363_v32 = vpop.f32.mrb[0].mxu1 }
 0x2a4   : > { %v1494_v33 = vpop.f32.mrb[1].mxu1  ;;  %v706_v34 = vsel %vm705_vm3, %v363_v32, -inf }
 0x2a5   : > { %v366_v35 = vpop.f32.mrb[2].mxu1  ;;  %707 = vmax.xlane.f32.xlu1 %v706_v34 }
 0x2a6   : > { %v1495_v36 = vpop.f32.mrb[3].mxu1 }
 0x30a   : > { %v411_v37 = vpop.f32.mrb[4].mxu0 }
 0x30b   : > { %v1500_v38 = vpop.f32.mrb[5].mxu0  ;;  %v709_v39 = vsel %vm705_vm3, %v411_v37, -inf }
 0x30c   : > { %710 = vmax.xlane.f32.xlu0 %v709_v39  ;;  %v414_v40 = vpop.f32.mrb[6].mxu0 }
 0x30d   : > { %v1501_v41 = vpop.f32.mrb[7].mxu0 }
 0x30e   : > { %v459_v42 = vpop.f32.mrb[4].mxu1 }
 0x30f   : > { %v1506_v43 = vpop.f32.mrb[5].mxu1  ;;  %v712_v44 = vsel %vm705_vm3, %v459_v42, -inf }
 0x310   : > { %v462_v45 = vpop.f32.mrb[6].mxu1  ;;  %713 = vmax.xlane.f32.xlu0 %v712_v44 }
 0x311   : > { %v1507_v46 = vpop.f32.mrb[7].mxu1 }
 0x312   : > { %v507_v47 = vpop.f32.mrb[8].mxu0 }
 0x313   : > { %v1512_v48 = vpop.f32.mrb[9].mxu0  ;;  %v715_v49 = vsel %vm705_vm3, %v507_v47, -inf }
 0x314   : > { %716 = vmax.xlane.f32.xlu1 %v715_v49  ;;  %v510_v50 = vpop.f32.mrb[10].mxu0 }
 0x315   : > { %v1513_v51 = vpop.f32.mrb[11].mxu0 }
 0x316   : > { %v2199_v52 = vpop.f32.mrb[8].mxu1 }
 0x317   : > { %v1518_v53 = vpop.f32.mrb[9].mxu1  ;;  %v718_v54 = vsel %vm705_vm3, %v2199_v52, -inf }
 0x318   : > { %v558_v55 = vpop.f32.mrb[10].mxu1  ;;  %719 = vmax.xlane.f32.xlu0 %v718_v54 }
 0x319   : > { %v1519_v56 = vpop.f32.mrb[11].mxu1 }
 0x31a   : > { %v603_v57 = vpop.f32.mrb[12].mxu0 }
 0x31b   : > { %v1524_v58 = vpop.f32.mrb[13].mxu0  ;;  %v721_v59 = vsel %vm705_vm3, %v603_v57, -inf }
 0x31c   : > { %722 = vmax.xlane.f32.xlu1 %v721_v59  ;;  %v606_v60 = vpop.f32.mrb[14].mxu0 }
 0x31d   : > { %v1525_v61 = vpop.f32.mrb[15].mxu0 }
 0x31e   : > { %v2204_v62 = vpop.f32.mrb[12].mxu1 }
 0x31f   : > { %v1530_v63 = vpop.f32.mrb[13].mxu1  ;;  %v724_v1 = vsel %vm705_vm3, %v2204_v62, -inf }
 0x320   : > { %v654_v2 = vpop.f32.mrb[14].mxu1  ;;  %725 = vmax.xlane.f32.xlu0 %v724_v1 }
 0x321   : > { %v1531_v3 = vpop.f32.mrb[15].mxu1 }
 0x322   : > { %v699_v4 = vpop.f32.mrb[16].mxu0 }
 0x323   : > { %v1536_v6 = vpop.f32.mrb[17].mxu0  ;;  %v727_v7 = vsel %vm705_vm3, %v699_v4, -inf }
 0x324   : > { %728 = vmax.xlane.f32.xlu1 %v727_v7  ;;  %v702_v8 = vpop.f32.mrb[18].mxu0 }
 0x325   : > { %v1537_v15 = vpop.f32.mrb[19].mxu0 }
 0x332   : > { %v708_v17 = vpop.xlane.xlu1 %707 }
 0x333   : > { %v730_v18 = vsub.f32 %v363_v32, %v708_v17 }
 0x335   : > { %851 = vrot.lane.b32.xlu1 %v2128_v10, %s1890_s24  ;;  %v738_v19 = vmul.f32 1.442695, %v730_v18 }
 0x336   : > { %802 = vrot.lane.b32.xlu0 %v2116_v5, %s1890_s24 }
 0x337   : > { %1685 = vpow2.f32 %v738_v19 }
 0x339   : > { %899 = vrot.lane.b32.xlu1 %v2133_v12, %s1890_s24 }
 0x33a   : > { %947 = vrot.lane.b32.xlu0 %v2126_v9, %s1890_s24 }
 0x33d   : > { %995 = vrot.lane.b32.xlu1 %v2131_v11, %s1890_s24 }
 0x341   : > { %v2219_v20 = vpop.eup %1685 }
 0x342   : > { %v754_v10 = vsel %vm705_vm3, %v2219_v20, 0.0 }
 0x359   : > { %755 = vadd.xlane.f32.xlu0 %v754_v10 }
 0x399   : > { %v711_v5 = vpop.xlane.xlu0 %710 }
 0x39a   : > { %v731_v21 = vsub.f32 %v411_v37, %v711_v5 }
 0x39c   : > { %v740_v22 = vmul.f32 1.442695, %v731_v21 }
 0x39d   : > { %v714_v12 = vpop.xlane.xlu0 %713 }
 0x39e   : > { %1687 = vpow2.f32 %v740_v22  ;;  %v732_v23 = vsub.f32 %v459_v42, %v714_v12 }
 0x3a0   : > { %v742_v9 = vmul.f32 1.442695, %v732_v23 }
 0x3a1   : > { %v717_v24 = vpop.xlane.xlu1 %716 }
 0x3a2   : > { %1689 = vpow2.f32 %v742_v9  ;;  %v733_v11 = vsub.f32 %v507_v47, %v717_v24 }
 0x3a4   : > { %v744_v25 = vmul.f32 1.442695, %v733_v11 }
 0x3a5   : > { %v720_v27 = vpop.xlane.xlu0 %719 }
 0x3a6   : > { %1691 = vpow2.f32 %v744_v25  ;;  %v734_v48 = vsub.f32 %v2199_v52, %v720_v27 }
 0x3a8   : > { %v2223_v26 = vpop.eup %1687  ;;  %v746_v49 = vmul.f32 1.442695, %v734_v48 }
 0x3a9   : > { %v723_v28 = vpop.xlane.xlu1 %722  ;;  %v757_v29 = vsel %vm705_vm3, %v2223_v26, 0.0 }
 0x3aa   : > { %v735_v30 = vsub.f32 %v603_v57, %v723_v28  ;;  %758 = vadd.xlane.f32.xlu1 %v757_v29 }
 0x3ac   : > { %v2227_v31 = vpop.eup %1689  ;;  %v748_v32 = vmul.f32 1.442695, %v735_v30 }
 0x3ad   : > { %v726_v33 = vpop.xlane.xlu0 %725  ;;  %v760_v34 = vsel %vm705_vm3, %v2227_v31, 0.0 }
 0x3ae   : > { %1693 = vpow2.f32 %v748_v32  ;;  %761 = vadd.xlane.f32.xlu0 %v760_v34  ;;  %v736_v50 = vsub.f32 %v2204_v62, %v726_v33 }
 0x3b0   : > { %v2231_v35 = vpop.eup %1691  ;;  %v750_v51 = vmul.f32 1.442695, %v736_v50 }
 0x3b1   : > { %v803_v36 = vpop.permute.xlu0 %802  ;;  %v729_v37 = vpop.xlane.xlu1 %728  ;;  %v763_v38 = vsel %vm705_vm3, %v2231_v35, 0.0 }
 0x3b2   : > { %v809_v39 = vsel %vm807_vm4, %v803_v36, 0  ;;  %v737_v40 = vsub.f32 %v699_v4, %v729_v37  ;;  %764 = vadd.xlane.f32.xlu1 %v763_v38 }
 0x3b3   : > { %1539 = vmatpush3.bf16.msra.mxu1 %v809_v39 }
 0x3b4   : > { %v752_v41 = vmul.f32 1.442695, %v737_v40  ;;  %1550 = vmatprep.subr.bf16.mxu1 %v1880_v0 }
 0x3b5   : > { %v852_v42 = vpop.permute.xlu1 %851  ;;  %v948_v54 = vpop.permute.xlu0 %947 }
 0x3b6   : > { %1695 = vpow2.f32 %v752_v41  ;;  %v857_v43 = vsel %vm807_vm4, %v852_v42, 0  ;;  %v953_v7 = vsel %vm807_vm4, %v948_v54, 0 }
 0x3b7   : > { %1545 = vmatpush3.bf16.msra.mxu0 %v857_v43  ;;  %1697 = vpow2.f32 %v746_v49 }
 0x3b8   : > { %v2238_v44 = vpop.eup %1693  ;;  %1556 = vmatprep.subr.bf16.mxu0 %v1880_v0  ;;  %1699 = vpow2.f32 %v750_v51 }
 0x3b9   : > { %v769_v45 = vsel %vm705_vm3, %v2238_v44, 0.0  ;;  %v900_v58 = vpop.permute.xlu1 %899 }
 0x3ba   : > { %770 = vadd.xlane.f32.xlu1 %v769_v45  ;;  %v905_v60 = vsel %vm807_vm4, %v900_v58, 0 }
 0x3bd   : > { %v996_v61 = vpop.permute.xlu1 %995 }
 0x3be   : > { %v1001_v18 = vsel %vm807_vm4, %v996_v61, 0 }
 0x3c0   : > { %v2243_v46 = vpop.eup %1695 }
 0x3c1   : > { %v775_v47 = vsel %vm705_vm3, %v2243_v46, 0.0  ;;  %v2253_v53 = vpop.eup %1697 }
 0x3c2   : > { %776 = vadd.xlane.f32.xlu1 %v775_v47  ;;  %v766_v55 = vsel %vm705_vm3, %v2253_v53, 0.0  ;;  %v2257_v56 = vpop.eup %1699 }
 0x3c3   : > { %v772_v52 = vsel %vm705_vm3, %v2257_v56, 0.0 }
 0x3c4   : > { %1043 = vrot.lane.b32.xlu0 %v2139_v14, %s1890_s24 }
 0x3d3   : > { %1091 = vrot.lane.b32.xlu1 %v2137_v13, %s1890_s24 }
 0x3e3   : > { %767 = vadd.xlane.f32.xlu0 %v766_v55 }
 0x3e6   : > { %v756_v14 = vpop.xlane.xlu0 %755 }
 0x3e7   : > { %1701 = vrcp.f32 %v756_v14  ;;  %773 = vadd.xlane.f32.xlu0 %v772_v52 }
 0x3f1   : > { %v1702_v57 = vpop.eup %1701 }
 0x3f2   : > { %v786_v13 = vmul.f32 %v1702_v57, %v2219_v20 }
 0x3f4   : > { %v794_v59 = vpack.c.bf16 %v786_v13, %v786_v13 }
 0x3f6   : > { %1541 = vmatmul.mubr.msk.bf16.vlgmr.msra.gmra.mrb[16].mxu1 %vm705_vm3, %v794_v59  ;;  %v1683_v59 = vld [vmem:[#allocation7] sm:$0xff]  }
 0x3f7   : > { %1551 = vmatpush3.bf16.msra.mxu1 %v905_v60  ;;  %1552 = vmatprep.mubr.msk.bf16.mxu1 %vm1881_vm0, %v1880_v0  ;;  %v1684_v60 = vld [vmem:[#allocation7 + $0x8] sm:$0xff]  }
 0x3f8   : > { %1562 = vmatprep.subr.bf16.mxu1 %v1880_v0 }
 0x3fd   : > { %1139 = vrot.lane.b32.xlu0 %v2143_v16, %s1890_s24  ;;  %s2320_s24 = scalar_lea.hbm %s2369_s4, %s1441_s30 }
 0x437   : > { %v759_v62 = vpop.xlane.xlu1 %758 }
 0x438   : > { %1703 = vrcp.f32 %v759_v62 }
 0x43b   : > { %v762_v63 = vpop.xlane.xlu0 %761 }
 0x43c   : > { %1705 = vrcp.f32 %v762_v63 }
 0x43f   : > { %v765_v1 = vpop.xlane.xlu1 %764  ;;  %v1044_v20 = vpop.permute.xlu0 %1043 }
 0x440   : > { %1707 = vrcp.f32 %v765_v1  ;;  %v1049_v5 = vsel %vm807_vm4, %v1044_v20, 0 }
 0x442   : > { %v1704_v2 = vpop.eup %1703 }
 0x443   : > { %v787_v3 = vmul.f32 %v1704_v2, %v2223_v26 }
 0x445   : > { %v795_v4 = vpack.c.bf16 %v787_v3, %v787_v3 }
 0x446   : > { %v1706_v6 = vpop.eup %1705 }
 0x447   : > { %v788_v8 = vmul.f32 %v1706_v6, %v2227_v31  ;;  %1547 = vmatmul.mubr.msk.bf16.vlgmr.msra.gmra.mrb[20].mxu0 %vm705_vm3, %v795_v4  ;;  %v771_v15 = vpop.xlane.xlu1 %770 }
 0x448   : > { %1557 = vmatpush3.bf16.msra.mxu0 %v953_v7  ;;  %1709 = vrcp.f32 %v771_v15  ;;  %1558 = vmatprep.mubr.msk.bf16.mxu0 %vm1881_vm0, %v1880_v0 }
 0x449   : > { %v796_v16 = vpack.c.bf16 %v788_v8, %v788_v8  ;;  %1568 = vmatprep.subr.bf16.mxu0 %v1880_v0 }
 0x44a   : > { %v1708_v17 = vpop.eup %1707 }
 0x44b   : > { %v789_v19 = vmul.f32 %v1708_v17, %v2231_v35  ;;  %1553 = vmatmul.mubr.msk.bf16.vlgmr.msra.gmra.mrb[20].mxu1 %vm705_vm3, %v796_v16 }
 0x44c   : > { %1563 = vmatpush3.bf16.msra.mxu1 %v1001_v18  ;;  %1564 = vmatprep.mubr.msk.bf16.mxu1 %vm1881_vm0, %v1880_v0 }
 0x44d   : > { %v797_v10 = vpack.c.bf16 %v789_v19, %v789_v19  ;;  %1574 = vmatprep.subr.bf16.mxu1 %v1880_v0 }
 0x44f   : > { %1559 = vmatmul.mubr.msk.bf16.vlgmr.msra.gmra.mrb[24].mxu0 %vm705_vm3, %v797_v10  ;;  %v777_v23 = vpop.xlane.xlu1 %776 }
 0x450   : > { %1569 = vmatpush3.bf16.msra.mxu0 %v1049_v5  ;;  %1570 = vmatprep.mubr.msk.bf16.mxu0 %vm1881_vm0, %v1880_v0  ;;  %1711 = vrcp.f32 %v777_v23 }
 0x451   : > { %1580 = vmatprep.subr.bf16.mxu0 %v1880_v0 }
 0x452   : > { %v1710_v21 = vpop.eup %1709 }
 0x453   : > { %v791_v22 = vmul.f32 %v1710_v21, %v2238_v44  ;;  %v1092_v31 = vpop.permute.xlu1 %1091 }
 0x454   : > { %v1097_v34 = vsel %vm807_vm4, %v1092_v31, 0 }
 0x455   : > { %v799_v12 = vpack.c.bf16 %v791_v22, %v791_v22 }
 0x457   : > { %1571 = vmatmul.mubr.msk.bf16.vlgmr.msra.gmra.mrb[28].mxu0 %vm705_vm3, %v799_v12 }
 0x458   : > { %1582 = vmatprep.mubr.msk.bf16.mxu0 %vm1881_vm0, %v1880_v0 }
 0x45a   : > { %v1712_v24 = vpop.eup %1711 }
 0x45b   : > { %v793_v25 = vmul.f32 %v1712_v24, %v2243_v46 }
 0x45d   : > { %v801_v29 = vpack.c.bf16 %v793_v25, %v793_v25 }
 0x470   : > { %v768_v9 = vpop.xlane.xlu0 %767 }
 0x471   : > { %1713 = vrcp.f32 %v768_v9 }
 0x474   : > { %v774_v11 = vpop.xlane.xlu0 %773 }
 0x475   : > { %1715 = vrcp.f32 %v774_v11 }
 0x478   : > { %v1140_v26 = vpop.permute.xlu0 %1139 }
 0x479   : > { %v1145_v27 = vsel %vm807_vm4, %v1140_v26, 0 }
 0x47a   : > { %1581 = vmatpush3.bf16.msra.mxu0 %v1145_v27 }
 0x47b   : > { %v1714_v28 = vpop.eup %1713 }
 0x47c   : > { %v790_v30 = vmul.f32 %v1714_v28, %v2253_v53 }
 0x47d   : > { %1583 = vmatmul.mubr.msk.bf16.vlgmr.msra.gmra.mrb[32].mxu0 %vm705_vm3, %v801_v29  ;;  %v1436_v29 = vld [vmem:[%s2368_s3] ss:$0 sm:$0xff] }
 0x47e   : > { %v798_v32 = vpack.c.bf16 %v790_v30, %v790_v30 }
 0x47f   : > { %v1716_v33 = vpop.eup %1715 }
 0x480   : > { %1565 = vmatmul.mubr.msk.bf16.vlgmr.msra.gmra.mrb[24].mxu1 %vm705_vm3, %v798_v32  ;;  %v792_v35 = vmul.f32 %v1716_v33, %v2257_v56 }
 0x481   : > { %1575 = vmatpush3.bf16.msra.mxu1 %v1097_v34  ;;  %1576 = vmatprep.mubr.msk.bf16.mxu1 %vm1881_vm0, %v1880_v0 }
 0x482   : > { %1586 = vmatprep.subr.bf16.mxu1 %v1880_v0  ;;  %v800_v36 = vpack.c.bf16 %v792_v35, %v792_v35 }
 0x488   : > { %1577 = vmatmul.mubr.msk.bf16.vlgmr.msra.gmra.mrb[28].mxu1 %vm705_vm3, %v800_v36 }
 0x489   : > { %1590 = vmatprep.mubr.msk.bf16.mxu1 %vm1881_vm0, %v1880_v0  ;;  %1587 = vmatpush3.bf16.msra.mxu1 %v1683_v59 }
 0x48a   : > { %1588 = vmatprep.subr.bf16.mxu1 %v1880_v0 }
 0x48d   : > { %1589 = vmatpush3.bf16.msra.mxu1 %v1684_v60 }
 0x4c9   : > { %v2304_v37 = vpop.f32.mrb[16].mxu1 }
 0x4ca   : > { %v1542_v38 = vpop.f32.mrb[17].mxu1  ;;  %v1187_v10 = vpack.c.bf16 %v2304_v37, %v2304_v37 }
 0x4cb   : > { %v848_v39 = vpop.f32.mrb[18].mxu1 }
 0x4cc   : > { %v1543_v40 = vpop.f32.mrb[19].mxu1 }
 0x51a   : > { %v893_v41 = vpop.f32.mrb[20].mxu0 }
 0x51b   : > { %v1188_v42 = vpack.c.bf16 %v893_v41, %v893_v41  ;;  %v1548_v43 = vpop.f32.mrb[21].mxu0 }
 0x51c   : > { %v896_v44 = vpop.f32.mrb[22].mxu0 }
 0x51d   : > { %1196 = vrot.lane.b32.xlu1 %v1188_v42, %s1891_s20  ;;  %v1549_v45 = vpop.f32.mrb[23].mxu0  ;;  %s1803_s20 = scalar_lea.vmem %s2322_s6, 128 }
 0x51e   : > { %v941_v46 = vpop.f32.mrb[20].mxu1  ;;  %p1804_p8 = scmp.ne.s32.totalorder %s2322_s6, %s1803_s20 }
 0x51f   : > { %v1189_v47 = vpack.c.bf16 %v941_v46, %v941_v46  ;;  %v1554_v48 = vpop.f32.mrb[21].mxu1 }
 0x520   : > { %v944_v49 = vpop.f32.mrb[22].mxu1  ;;  %p1805_p1 = pnand %p1804_p8, %p2383_p0 }
 0x521   : > { %1199 = vrot.lane.b32.xlu0 %v1189_v47, %s1892_s28  ;;  %v1555_v50 = vpop.f32.mrb[23].mxu1  ;;  %s1898_s28 = smov [#allocation8]  }
 0x522   : > { %v989_v51 = vpop.f32.mrb[24].mxu0  ;;  %p1806_p3 = pneg %p1805_p1 }
 0x523   : > { %v1190_v53 = vpack.c.bf16 %v989_v51, %v989_v51  ;;  %v1560_v54 = vpop.f32.mrb[25].mxu0 }
 0x524   : > { %v992_v55 = vpop.f32.mrb[26].mxu0 }
 0x525   : > { %1202 = vrot.lane.b32.xlu1 %v1190_v53, %s1893_s11  ;;  %v1561_v56 = vpop.f32.mrb[27].mxu0  ;;  %s1807_s11 = sshll.u32 %s1898_s28, 4  ;;  %s1808_s11 = int_to_ptr.vmem [resolvable:$false] %s1807_s11 }
 0x526   : > { %p1810_p7 = scmp.lt.s32.totalorder %s2322_s6, %s1808_s11 }
 0x52a   : > { %v1085_v14 = vpop.f32.mrb[28].mxu0 }
 0x52b   : > { %v1192_v52 = vpack.c.bf16 %v1085_v14, %v1085_v14  ;;  %v1572_v57 = vpop.f32.mrb[29].mxu0 }
 0x52c   : > { %v1088_v13 = vpop.f32.mrb[30].mxu0 }
 0x52d   : > { %1208 = vrot.lane.b32.xlu1 %v1192_v52, %s1894_s12  ;;  %v1573_v58 = vpop.f32.mrb[31].mxu0  ;;  %s1809_s12 = scalar_lea.vmem %s1808_s11, 256 }
 0x52e   : > { %p1811_p9 = scmp.lt.s32.totalorder %s1809_s12, %s1803_s20 }
 0x530   : > { %p1812_p12 = por %p1811_p9, %p1810_p7 }
 0x532   : > { %p1813_p2 = pnand %p1812_p12, %p1806_p3 }
 0x550   : > { %v1181_v61 = vpop.f32.mrb[32].mxu0 }
 0x551   : > { %v1194_v62 = vpack.c.bf16 %v1181_v61, %v1181_v61  ;;  %v1584_v63 = vpop.f32.mrb[33].mxu0 }
 0x552   : > { %v1184_v1 = vpop.f32.mrb[34].mxu0 }
 0x553   : > { %v1037_v2 = vpop.f32.mrb[24].mxu1  ;;  %1214 = vrot.lane.b32.xlu1 %v1194_v62, %s1895_s25  ;;  %v1585_v3 = vpop.f32.mrb[35].mxu0 }
 0x554   : > { %v1191_v4 = vpack.c.bf16 %v1037_v2, %v1037_v2  ;;  %v1566_v6 = vpop.f32.mrb[25].mxu1 }
 0x555   : > { %v1040_v7 = vpop.f32.mrb[26].mxu1 }
 0x556   : > { %1205 = vrot.lane.b32.xlu0 %v1191_v4, %s1896_s7  ;;  %v1567_v8 = vpop.f32.mrb[27].mxu1 }
 0x55b   : > { %v1133_v15 = vpop.f32.mrb[28].mxu1 }
 0x55c   : > { %v1193_v16 = vpack.c.bf16 %v1133_v15, %v1133_v15  ;;  %v1578_v17 = vpop.f32.mrb[29].mxu1 }
 0x55d   : > { %v1136_v18 = vpop.f32.mrb[30].mxu1 }
 0x55e   : > { %1211 = vrot.lane.b32.xlu0 %v1193_v16, %s1897_s8  ;;  %v1579_v0 = vpop.f32.mrb[31].mxu1 }
 0x58f   : > { %v1197_v19 = vpop.permute.xlu1 %1196 }
 0x590   : > { %v1218_v21 = vsel %vm322_vm2, %v1187_v10, %v1197_v19 }
 0x593   : > { %v1200_v20 = vpop.permute.xlu0 %1199 }
 0x594   : > { %v1220_v12 = vsel %vm705_vm3, %v1218_v21, %v1200_v20 }
 0x597   : > { %v1203_v5 = vpop.permute.xlu1 %1202 }
 0x598   : > { %v1223_v23 = vsel %vm1221_vm5, %v1220_v12, %v1203_v5 }
 0x59f   : > { %v1209_v9 = vpop.permute.xlu1 %1208 }
 0x5c5   : > { %v1215_v26 = vpop.permute.xlu1 %1214 }
 0x5c8   : > { %v1206_v22 = vpop.permute.xlu0 %1205 }
 0x5c9   : > { %v1226_v24 = vsel %vm1224_vm6, %v1223_v23, %v1206_v22 }
 0x5ca   : > { %v1229_v25 = vsel %vm1227_vm7, %v1226_v24, %v1209_v9 }
 0x5d0   : > { %v1212_v11 = vpop.permute.xlu0 %1211 }
 0x5d1   : > { %v1232_v27 = vsel %vm1230_vm8, %v1229_v25, %v1212_v11 }
 0x5d2   : > { %v1235_v28 = vsel %vm1233_vm9, %v1232_v27, %v1215_v26 }
 0x5d3   : > { %1591 = vmatmul.mubr.msk.bf16.vlgmr.msra.gmra.mrb[32].mxu1 %vm260_vm1, %v1235_v28 }
 0x6a6   : > { %v1295_v30 = vpop.f32.mrb[32].mxu1 }
 0x6a7   : > { %v1296_v31 = vadd.f32 %v1436_v29, %v1295_v30  ;;  %v1592_v32 = vpop.f32.mrb[33].mxu1 }
 0x6a8   : > { %v1298_v33 = vpop.f32.mrb[34].mxu1 }
 0x6a9   : > { %v1593_v34 = vpop.f32.mrb[35].mxu1  ;;  %1301 = vst.msk [vmem:[%s241_s5] sm:$0xff] %vm260_vm1, %v1296_v31 }
 0x6aa   : > { %1816 = shalt.err (!%p1813_p2)
}
 0x6ab   : > { %s1817_s29 = scalar_lea.hbm %s2320_s24, 128  ;;  %s1821_s8 = scalar_lea.hbm %s2369_s4, 256 }
 0x6ac   : > { %p1818_p13 = scmp.ne.s32.totalorder %s2320_s24, %s1817_s29  ;;  %p1822_p4 = scmp.lt.u32.totalorder %s2320_s24, %s2369_s4 }
 0x6ad   : > { %p1823_p5 = scmp.lt.u32.totalorder %s1821_s8, %s1817_s29  ;;  %p1825_p8 = scmp.lt.u32.totalorder %s1817_s29, %s2320_s24 }
 0x6ae   : > { %p1819_p6 = pnand %p1818_p13, %p2383_p0 }
 0x6af   : > { %p1824_p11 = por %p1823_p5, %p1822_p4 }
 0x6b0   : > { %p1820_p10 = pneg %p1819_p6 }
 0x6b1   : > { %p1826_p1 = por %p1825_p8, %p1824_p11 }
 0x6b3   : > { %p1827_p3 = pnand %p1826_p1, %p1820_p10 }
 0x6b5   : > { %1830 = shalt.err (!%p1827_p3)
}
 0x6b6   : > { %1604 = dma.vmem_to_hbm [thread:$0]  (%p2383_p0), %s2322_s6, 128, %s2320_s24, %s1303_s19  }
 0x6b7 PF: > { %s1328_s27 = sand.u32 1, %s1861_s15   ;;  %p2384_p7 = scmp.ne.s32.totalorder %s2374_s22, 0 }
 0x6b8   : > { %p2385_p9 = scmp.ge.s32.totalorder %s1873_s18, 2  ;;  %s1329_s30 = scalar_lea.sflag [#allocation4], %s1328_s27 }
 0x6ba   : > { %p1618_p12 = pnand %p2385_p9, %p2384_p7 }
 0x6bc   : > { %1856 = dma.done.wait (!%p1618_p12), %s1329_s30, 128  }
 0x6bd   : > { %1858 = vsyncadd (!%p1618_p12), %s1329_s30, 4294967168  ;;  %p18_p2 = scmp.ge.s32.totalorder %s2034_s9, 4   ;;  %s2386_s15 = smov %s1865_s16 }
 0x6be   : > { %s2387_s16 = smov %s1869_s17  ;;  %s2388_s17 = smov %s2050_s14 }
 0x6bf   : > { %s2389_s18 = smov %s2034_s9  ;;  %20 = sbr.rel (!%p18_p2) target bundleno = 6 (0x6), region = 89 }
 0x6c6   :  { %1334 = vsyncpa [#allocation3], 1 }
 0x6c7   :  { %1336 = vsyncpa [#allocation3 + $0x1], 1 }
 0x6c8   :  { %1337 = vsyncpa [#allocation6], 1 }
 0x6c9   :  { %1338 = vsyncpa [#allocation4], 1 }
 0x6ca   :  { %1340 = vsyncpa [#allocation4 + $0x1], 1 }

</bundles_post_ra>
